<compile_context>
chip_gen: v7x
topology: tpu7x:2x2x1
jax: 0.10.0
libtpu: 0.0.40
codegen_flags: <defaults>
</compile_context>

<pallas_src>
import functools
import math

import jax
import jax.numpy as jnp
from jax.experimental import pallas as pl
from jax.experimental.pallas import tpu as pltpu


# ------------------------ kernel 1: fused QKV projection + RoPE ------------------------
def qkv_rope_kernel(x_ref, wqkv_ref, cos_ref, sin_ref, q_ref, k_ref, v_ref, *,
                    n_heads: int, d_k: int):
    """One (batch, seq-tile) step: qkv = x @ Wqkv, rotate-half RoPE, head-major outputs."""
    D = n_heads * d_k
    x = x_ref[...]                                   # (tp, D)   caller dtype (bf16-ready)
    w = wqkv_ref[...]                                # (D, 3D)   constant block (DMA'd once)
    # Single lane-dense head-batched matmul on the MXU, f32 accumulation.
    qkv = jnp.dot(x, w, preferred_element_type=jnp.float32)     # (tp, 3D) f32

    cos = cos_ref[...].astype(jnp.float32)           # (tp, d_k)  full lane width
    sin = sin_ref[...].astype(jnp.float32)           # (tp, d_k)  signed: [-sin | +sin]
    half = d_k // 2

    def rope(t):   # rotate-half on permuted columns == interleaved RoPE on the original
        return t * cos + pltpu.roll(t, shift=half, axis=1) * sin

    # Per-head epilogue only (no per-head matmuls): with d_k a multiple of 128 these are
    # vreg-aligned column slices and leading-axis stores, i.e. no lane relayout.
    for h in range(n_heads):
        qh = qkv[:, h * d_k:(h + 1) * d_k]
        kh = qkv[:, D + h * d_k:D + (h + 1) * d_k]
        vh = qkv[:, 2 * D + h * d_k:2 * D + (h + 1) * d_k]
        q_ref[h] = rope(qh).astype(q_ref.dtype)      # (tp, d_k) into (H, tp, d_k) block
        k_ref[h] = rope(kh).astype(k_ref.dtype)
        v_ref[h] = vh.astype(v_ref.dtype)


# ---------------- kernel 2: flash attention + fused output projection -----------------
def flash_attn_kernel(q_ref, k_ref, v_ref, wout_ref, o_ref,
                      m_sc, l_sc, acc_sc, attn_sc, *, n_heads: int, d_k: int):
    """Grid (B, q-tile, kv-tile): online softmax over the kv axis with head-batched
    matmuls; output projection fused into the kv-axis finalize (lane-dense store)."""
    kv_i = pl.program_id(2)

    @pl.when(kv_i == 0)
    def _init():
        m_sc[...] = jnp.full(m_sc.shape, -jnp.inf, dtype=m_sc.dtype)
        l_sc[...] = jnp.zeros(l_sc.shape, dtype=l_sc.dtype)
        acc_sc[...] = jnp.zeros(acc_sc.shape, dtype=acc_sc.dtype)

    q = q_ref[...]                                   # (H, tq, d_k)  scale folded into Wq
    k = k_ref[...]                                   # (H, tk, d_k)
    v = v_ref[...]                                   # (H, tk, d_k)

    # Head-batched score matmul: one dot_general, f32 accumulation.
    s = jnp.einsum('hqd,hkd->hqk', q, k, preferred_element_type=jnp.float32)  # (H, tq, tk)

    m_prev = m_sc[...]                               # (H, tq, 1)
    m_new = jnp.maximum(m_prev, jnp.max(s, axis=-1, keepdims=True))
    alpha = jnp.exp(m_prev - m_new)
    p = jnp.exp(s - m_new)                           # (H, tq, tk) f32
    l_sc[...] = alpha * l_sc[...] + jnp.sum(p, axis=-1, keepdims=True)
    acc_sc[...] = alpha * acc_sc[...] + jnp.einsum(
        'hqk,hkd->hqd', p.astype(v.dtype), v, preferred_element_type=jnp.float32)
    m_sc[...] = m_new

    @pl.when(kv_i == pl.num_programs(2) - 1)
    def _finalize():
        inv_l = pl.reciprocal(l_sc[...], approx=True)      # EUP slot, effectively free
        out_h = acc_sc[...] * inv_l                        # (H, tq, d_k) f32
        # Repack heads into a lane-dense (tq, D) scratch via 128-aligned column writes
        # (no jnp.concatenate relayout), then fuse the out-projection: single unmasked
        # (tq, D) output store.
        for h in range(n_heads):
            attn_sc[:, h * d_k:(h + 1) * d_k] = out_h[h].astype(attn_sc.dtype)
        o_ref[...] = jnp.dot(attn_sc[...], wout_ref[...],
                             preferred_element_type=jnp.float32).astype(o_ref.dtype)


# ------------------------------------ wrapper ------------------------------------------
def mha_pallas(x, wqkv_t, wout_t, cos_full, sin_signed, n_heads, *,
               block_q=256, block_kv=256, block_proj=256,
               vmem_limit_bytes=48 * 1024 * 1024):
    B, T, D = x.shape
    assert D % n_heads == 0
    d_k = D // n_heads
    bq, bkv, bp = min(block_q, T), min(block_kv, T), min(block_proj, T)
    assert T % bq == 0 and T % bkv == 0 and T % bp == 0

    # ---- pass 1: fused QKV projection + RoPE -> head-major (B, H, T, d_k) ----
    qkv_kernel = functools.partial(qkv_rope_kernel, n_heads=n_heads, d_k=d_k)
    qkv_shape = jax.ShapeDtypeStruct((B, n_heads, T, d_k), x.dtype)
    q, k, v = pl.pallas_call(
        qkv_kernel,
        out_shape=(qkv_shape, qkv_shape, qkv_shape),
        grid=(B, T // bp),
        in_specs=[
            pl.BlockSpec((None, bp, D), lambda b, t: (b, t, 0)),   # x tile
            # Constant-index fused QKV weight (DMA'd once).  TODO(synk): on v7x (64 MiB
            # VMEM) add pipeline_mode=pl.Buffered(1) / bf16 weights for very large D.
            pl.BlockSpec((D, 3 * D), lambda b, t: (0, 0)),
            pl.BlockSpec((bp, d_k), lambda b, t: (t, 0)),          # cos   (full lane width)
            pl.BlockSpec((bp, d_k), lambda b, t: (t, 0)),          # -sin|+sin
        ],
        out_specs=(
            pl.BlockSpec((None, n_heads, bp, d_k), lambda b, t: (b, 0, t, 0)),
            pl.BlockSpec((None, n_heads, bp, d_k), lambda b, t: (b, 0, t, 0)),
            pl.BlockSpec((None, n_heads, bp, d_k), lambda b, t: (b, 0, t, 0)),
        ),
        compiler_params=pltpu.CompilerParams(
            dimension_semantics=("parallel", "parallel"),
            vmem_limit_bytes=vmem_limit_bytes),
    )(x, wqkv_t, cos_full, sin_signed)

    # ---- pass 2: flash attention (online softmax over kv tiles) + fused out-proj ----
    flash_kernel = functools.partial(flash_attn_kernel, n_heads=n_heads, d_k=d_k)
    out = pl.pallas_call(
        flash_kernel,
        out_shape=jax.ShapeDtypeStruct((B, T, D), x.dtype),
        grid=(B, T // bq, T // bkv),           # kv (reduction) axis innermost
        in_specs=[
            pl.BlockSpec((None, n_heads, bq, d_k), lambda b, qi, ki: (b, 0, qi, 0)),   # q
            pl.BlockSpec((None, n_heads, bkv, d_k), lambda b, qi, ki: (b, 0, ki, 0)),  # k
            pl.BlockSpec((None, n_heads, bkv, d_k), lambda b, qi, ki: (b, 0, ki, 0)),  # v
            pl.BlockSpec((D, D), lambda b, qi, ki: (0, 0)),                            # Wout
        ],
        out_specs=pl.BlockSpec((None, bq, D), lambda b, qi, ki: (b, qi, 0)),
        scratch_shapes=[
            pltpu.VMEM((n_heads, bq, 1), jnp.float32),     # running max
            pltpu.VMEM((n_heads, bq, 1), jnp.float32),     # running denominator
            pltpu.VMEM((n_heads, bq, d_k), jnp.float32),   # running numerator
            pltpu.VMEM((bq, D), x.dtype),                  # lane-dense head repack
        ],
        compiler_params=pltpu.CompilerParams(
            dimension_semantics=("parallel", "parallel", "arbitrary"),
            vmem_limit_bytes=vmem_limit_bytes),
    )(q, k, v, wout_t)
    return out


def prepare_mha_params(w_attn, w_out, n_heads, seq_len, base=10000.0):
    """Permute q/k output columns (even head-dims first, then odd), fold 1/sqrt(d_k) into
    Wq, transpose to (in, out) layout, and build full-lane-width RoPE tables."""
    D = w_attn.shape[1]
    d_k = D // n_heads
    assert d_k % 2 == 0
    scale = 1.0 / math.sqrt(d_k)
    perm_head = jnp.concatenate([jnp.arange(0, d_k, 2), jnp.arange(1, d_k, 2)])
    perm = jnp.concatenate([h * d_k + perm_head for h in range(n_heads)])
    wq = w_attn[:D][perm] * scale            # fold softmax scale (RoPE is linear)
    wk = w_attn[D:2 * D][perm]
    wv = w_attn[2 * D:]
    wqkv_t = jnp.concatenate([wq, wk, wv], axis=0).T      # (D, 3D): y = x @ W
    wout_t = w_out.T                                      # (D, D)

    inv_freq = 1.0 / base ** (jnp.arange(0, d_k, 2, dtype=jnp.float32) / d_k)
    freqs = jnp.arange(seq_len, dtype=jnp.float32)[:, None] * inv_freq[None, :]  # (T, d_k//2)
    cos_full = jnp.concatenate([jnp.cos(freqs), jnp.cos(freqs)], axis=-1)        # (T, d_k)
    sin_signed = jnp.concatenate([-jnp.sin(freqs), jnp.sin(freqs)], axis=-1)     # (T, d_k)
    return wqkv_t, wout_t, cos_full, sin_signed


# ------------- pure-JAX reference replicating the PyTorch module exactly ---------------
def reference_mha(x, w_attn, w_out, n_heads, base=10000.0):
    B, T, D = x.shape
    d_k = D // n_heads
    qkv = x @ w_attn.T                                    # nn.Linear: y = x W^T
    q, k, v = jnp.split(qkv, 3, axis=-1)
    q = q.reshape(B, T, n_heads, d_k).transpose(0, 2, 1, 3)
    k = k.reshape(B, T, n_heads, d_k).transpose(0, 2, 1, 3)
    v = v.reshape(B, T, n_heads, d_k).transpose(0, 2, 1, 3)

    inv_freq = 1.0 / base ** (jnp.arange(0, d_k, 2, dtype=jnp.float32) / d_k)
    freqs = jnp.arange(T, dtype=jnp.float32)[:, None] * inv_freq[None, :]
    c = jnp.cos(freqs)[None, None]
    s = jnp.sin(freqs)[None, None]

    def rope(t):
        t1, t2 = t[..., 0::2], t[..., 1::2]
        out = jnp.zeros_like(t)
        out = out.at[..., 0::2].set(t1 * c - t2 * s)
        out = out.at[..., 1::2].set(t1 * s + t2 * c)
        return out

    q, k = rope(q), rope(k)
    scores = (q @ jnp.swapaxes(k, -2, -1)) * (1.0 / math.sqrt(d_k))
    attn = jax.nn.softmax(scores, axis=-1)
    out = attn @ v
    out = out.transpose(0, 2, 1, 3).reshape(B, T, D)
    return out @ w_out.T


if __name__ == "__main__":
    # Small but TPU-tile-aligned shapes: d_k = 128 keeps every head slice vreg-aligned,
    # and T = 256 with 128-sized q/kv tiles exercises the multi-tile flash grid.
    B, T, d_model, n_heads = 2, 256, 256, 2
    d_k = d_model // n_heads
    base = 10000.0

    key = jax.random.PRNGKey(0)
    kx, kw1, kw2 = jax.random.split(key, 3)
    x = jax.random.normal(kx, (B, T, d_model), dtype=jnp.float32)
    # Deterministic synthetic parameters with nn.Linear shapes:
    #   attn: (3*d_model, d_model), out_proj: (d_model, d_model), no bias.
    w_attn = jax.random.normal(kw1, (3 * d_model, d_model), dtype=jnp.float32) * 0.05
    w_out = jax.random.normal(kw2, (d_model, d_model), dtype=jnp.float32) * 0.05

    wqkv_t, wout_t, cos_full, sin_signed = prepare_mha_params(
        w_attn, w_out, n_heads=n_heads, seq_len=T, base=base)

    out = mha_pallas(x, wqkv_t, wout_t, cos_full, sin_signed, n_heads,
                     block_q=128, block_kv=128, block_proj=128)
    out = jax.block_until_ready(out)

    ref = reference_mha(x, w_attn, w_out, n_heads, base=base)
    assert out.shape == (B, T, d_model)
    max_err = jnp.max(jnp.abs(out - ref))
    # Tolerance accommodates the EUP approximate reciprocal in the softmax denominator.
    assert jnp.allclose(out, ref, atol=5e-3, rtol=5e-3), f"max err {max_err}"
    print("KERNEL_OK")
</pallas_src>

<mosaic_0001>
module attributes {stable_mosaic.version = 11 : i64} {
  func.func @qkv_rope_kernel(%arg0: i32, %arg1: i32, %arg2: memref<1x128x256xf32, #tpu.memory_space<vmem>>, %arg3: memref<256x768xf32, #tpu.memory_space<vmem>>, %arg4: memref<128x128xf32, #tpu.memory_space<vmem>>, %arg5: memref<128x128xf32, #tpu.memory_space<vmem>>, %arg6: memref<1x2x128x128xf32, #tpu.memory_space<vmem>>, %arg7: memref<1x2x128x128xf32, #tpu.memory_space<vmem>>, %arg8: memref<1x2x128x128xf32, #tpu.memory_space<vmem>>) attributes {dimension_semantics = [#tpu.dimension_semantics<parallel>, #tpu.dimension_semantics<parallel>], iteration_bounds = array<i64: 2, 2>, scalar_prefetch = 0 : i64, scratch_operands = 0 : i64, tpu.core_type = #tpu.core_type<tc>, window_params = [{transform_indices = @transform_0, window_bounds = array<i64: 1, 128, 256>}, {pipeline_mode = #tpu.pipeline_mode<synchronous>, transform_indices = @transform_1, window_bounds = array<i64: 256, 768>}, {transform_indices = @transform_2, window_bounds = array<i64: 128, 128>}, {transform_indices = @transform_3, window_bounds = array<i64: 128, 128>}, {transform_indices = @transform_4, window_bounds = array<i64: 1, 2, 128, 128>}, {transform_indices = @transform_5, window_bounds = array<i64: 1, 2, 128, 128>}, {transform_indices = @transform_6, window_bounds = array<i64: 1, 2, 128, 128>}]} {
    %c0 = arith.constant 0 : index
    %c0_0 = arith.constant 0 : index
    %c0_1 = arith.constant 0 : index
    %0 = vector.load %arg2[%c0, %c0_0, %c0_1] : memref<1x128x256xf32, #tpu.memory_space<vmem>>, vector<1x128x256xf32>
    %1 = vector.shape_cast %0 : vector<1x128x256xf32> to vector<128x256xf32>
    %c0_2 = arith.constant 0 : index
    %c0_3 = arith.constant 0 : index
    %2 = vector.load %arg3[%c0_2, %c0_3] : memref<256x768xf32, #tpu.memory_space<vmem>>, vector<256x768xf32>
    %cst = arith.constant dense<0.000000e+00> : vector<128x768xf32>
    %3 = tpu.matmul %1, %2, %cst {dimension_numbers = #tpu.dot_dimension_numbers<[1], [0], [0], [1], [0, 0, 1, 1], [], []>} : vector<128x256xf32>, vector<256x768xf32>, vector<128x768xf32> -> vector<128x768xf32>
    %c0_4 = arith.constant 0 : index
    %c0_5 = arith.constant 0 : index
    %4 = vector.load %arg4[%c0_4, %c0_5] : memref<128x128xf32, #tpu.memory_space<vmem>>, vector<128x128xf32>
    %c0_6 = arith.constant 0 : index
    %c0_7 = arith.constant 0 : index
    %5 = vector.load %arg5[%c0_6, %c0_7] : memref<128x128xf32, #tpu.memory_space<vmem>>, vector<128x128xf32>
    %6 = vector.extract_strided_slice %3 {offsets = [0, 0], sizes = [128, 128], strides = [1, 1]} : vector<128x768xf32> to vector<128x128xf32>
    %7 = vector.extract_strided_slice %3 {offsets = [0, 256], sizes = [128, 128], strides = [1, 1]} : vector<128x768xf32> to vector<128x128xf32>
    %8 = vector.extract_strided_slice %3 {offsets = [0, 512], sizes = [128, 128], strides = [1, 1]} : vector<128x768xf32> to vector<128x128xf32>
    %9 = arith.mulf %6, %4 : vector<128x128xf32>
    %c64_i32 = arith.constant 64 : i32
    %10 = tpu.dynamic_rotate %6 by %c64_i32 dim 1 : vector<128x128xf32>, i32 -> vector<128x128xf32>
    %11 = arith.mulf %10, %5 : vector<128x128xf32>
    %12 = arith.addf %9, %11 : vector<128x128xf32>
    %c0_8 = arith.constant 0 : index
    %c0_9 = arith.constant 0 : index
    %c0_10 = arith.constant 0 : index
    %c0_11 = arith.constant 0 : index
    %13 = vector.load %arg6[%c0_8, %c0_9, %c0_10, %c0_11] : memref<1x2x128x128xf32, #tpu.memory_space<vmem>>, vector<1x1x128x128xf32>
    %14 = vector.shape_cast %13 : vector<1x1x128x128xf32> to vector<128x128xf32>
    %15 = vector.shape_cast %12 : vector<128x128xf32> to vector<1x1x128x128xf32>
    tpu.vector_store %arg6[%c0_8, %c0_9, %c0_10, %c0_11], %15 {strides = array<i32>} : memref<1x2x128x128xf32, #tpu.memory_space<vmem>>, vector<1x1x128x128xf32>,
    %16 = arith.mulf %7, %4 : vector<128x128xf32>
    %c64_i32_12 = arith.constant 64 : i32
    %17 = tpu.dynamic_rotate %7 by %c64_i32_12 dim 1 : vector<128x128xf32>, i32 -> vector<128x128xf32>
    %18 = arith.mulf %17, %5 : vector<128x128xf32>
    %19 = arith.addf %16, %18 : vector<128x128xf32>
    %c0_13 = arith.constant 0 : index
    %c0_14 = arith.constant 0 : index
    %c0_15 = arith.constant 0 : index
    %c0_16 = arith.constant 0 : index
    %20 = vector.load %arg7[%c0_13, %c0_14, %c0_15, %c0_16] : memref<1x2x128x128xf32, #tpu.memory_space<vmem>>, vector<1x1x128x128xf32>
    %21 = vector.shape_cast %20 : vector<1x1x128x128xf32> to vector<128x128xf32>
    %22 = vector.shape_cast %19 : vector<128x128xf32> to vector<1x1x128x128xf32>
    tpu.vector_store %arg7[%c0_13, %c0_14, %c0_15, %c0_16], %22 {strides = array<i32>} : memref<1x2x128x128xf32, #tpu.memory_space<vmem>>, vector<1x1x128x128xf32>,
    %c0_17 = arith.constant 0 : index
    %c0_18 = arith.constant 0 : index
    %c0_19 = arith.constant 0 : index
    %c0_20 = arith.constant 0 : index
    %23 = vector.load %arg8[%c0_17, %c0_18, %c0_19, %c0_20] : memref<1x2x128x128xf32, #tpu.memory_space<vmem>>, vector<1x1x128x128xf32>
    %24 = vector.shape_cast %23 : vector<1x1x128x128xf32> to vector<128x128xf32>
    %25 = vector.shape_cast %8 : vector<128x128xf32> to vector<1x1x128x128xf32>
    tpu.vector_store %arg8[%c0_17, %c0_18, %c0_19, %c0_20], %25 {strides = array<i32>} : memref<1x2x128x128xf32, #tpu.memory_space<vmem>>, vector<1x1x128x128xf32>,
    %26 = vector.extract_strided_slice %3 {offsets = [0, 128], sizes = [128, 128], strides = [1, 1]} : vector<128x768xf32> to vector<128x128xf32>
    %27 = vector.extract_strided_slice %3 {offsets = [0, 384], sizes = [128, 128], strides = [1, 1]} : vector<128x768xf32> to vector<128x128xf32>
    %28 = vector.extract_strided_slice %3 {offsets = [0, 640], sizes = [128, 128], strides = [1, 1]} : vector<128x768xf32> to vector<128x128xf32>
    %29 = arith.mulf %26, %4 : vector<128x128xf32>
    %c64_i32_21 = arith.constant 64 : i32
    %30 = tpu.dynamic_rotate %26 by %c64_i32_21 dim 1 : vector<128x128xf32>, i32 -> vector<128x128xf32>
    %31 = arith.mulf %30, %5 : vector<128x128xf32>
    %32 = arith.addf %29, %31 : vector<128x128xf32>
    %c0_22 = arith.constant 0 : index
    %c1 = arith.constant 1 : index
    %c0_23 = arith.constant 0 : index
    %c0_24 = arith.constant 0 : index
    %33 = vector.load %arg6[%c0_22, %c1, %c0_23, %c0_24] : memref<1x2x128x128xf32, #tpu.memory_space<vmem>>, vector<1x1x128x128xf32>
    %34 = vector.shape_cast %33 : vector<1x1x128x128xf32> to vector<128x128xf32>
    %35 = vector.shape_cast %32 : vector<128x128xf32> to vector<1x1x128x128xf32>
    tpu.vector_store %arg6[%c0_22, %c1, %c0_23, %c0_24], %35 {strides = array<i32>} : memref<1x2x128x128xf32, #tpu.memory_space<vmem>>, vector<1x1x128x128xf32>,
    %36 = arith.mulf %27, %4 : vector<128x128xf32>
    %c64_i32_25 = arith.constant 64 : i32
    %37 = tpu.dynamic_rotate %27 by %c64_i32_25 dim 1 : vector<128x128xf32>, i32 -> vector<128x128xf32>
    %38 = arith.mulf %37, %5 : vector<128x128xf32>
    %39 = arith.addf %36, %38 : vector<128x128xf32>
    %c0_26 = arith.constant 0 : index
    %c1_27 = arith.constant 1 : index
    %c0_28 = arith.constant 0 : index
    %c0_29 = arith.constant 0 : index
    %40 = vector.load %arg7[%c0_26, %c1_27, %c0_28, %c0_29] : memref<1x2x128x128xf32, #tpu.memory_space<vmem>>, vector<1x1x128x128xf32>
    %41 = vector.shape_cast %40 : vector<1x1x128x128xf32> to vector<128x128xf32>
    %42 = vector.shape_cast %39 : vector<128x128xf32> to vector<1x1x128x128xf32>
    tpu.vector_store %arg7[%c0_26, %c1_27, %c0_28, %c0_29], %42 {strides = array<i32>} : memref<1x2x128x128xf32, #tpu.memory_space<vmem>>, vector<1x1x128x128xf32>,
    %c0_30 = arith.constant 0 : index
    %c1_31 = arith.constant 1 : index
    %c0_32 = arith.constant 0 : index
    %c0_33 = arith.constant 0 : index
    %43 = vector.load %arg8[%c0_30, %c1_31, %c0_32, %c0_33] : memref<1x2x128x128xf32, #tpu.memory_space<vmem>>, vector<1x1x128x128xf32>
    %44 = vector.shape_cast %43 : vector<1x1x128x128xf32> to vector<128x128xf32>
    %45 = vector.shape_cast %28 : vector<128x128xf32> to vector<1x1x128x128xf32>
    tpu.vector_store %arg8[%c0_30, %c1_31, %c0_32, %c0_33], %45 {strides = array<i32>} : memref<1x2x128x128xf32, #tpu.memory_space<vmem>>, vector<1x1x128x128xf32>,
    return
  }
  func.func @transform_0(%arg0: i32, %arg1: i32) -> (i32, i32, i32) {
    %c0_i32 = arith.constant 0 : i32
    %c0_i32_0 = arith.constant 0 : i32
    return %arg0, %arg1, %c0_i32 : i32, i32, i32
  }
  func.func @transform_1(%arg0: i32, %arg1: i32) -> (i32, i32) {
    %c0_i32 = arith.constant 0 : i32
    %c0_i32_0 = arith.constant 0 : i32
    %c0_i32_1 = arith.constant 0 : i32
    return %c0_i32, %c0_i32_0 : i32, i32
  }
  func.func @transform_2(%arg0: i32, %arg1: i32) -> (i32, i32) {
    %c0_i32 = arith.constant 0 : i32
    %c0_i32_0 = arith.constant 0 : i32
    return %arg1, %c0_i32 : i32, i32
  }
  func.func @transform_3(%arg0: i32, %arg1: i32) -> (i32, i32) {
    %c0_i32 = arith.constant 0 : i32
    %c0_i32_0 = arith.constant 0 : i32
    return %arg1, %c0_i32 : i32, i32
  }
  func.func @transform_4(%arg0: i32, %arg1: i32) -> (i32, i32, i32, i32) {
    %c0_i32 = arith.constant 0 : i32
    %c0_i32_0 = arith.constant 0 : i32
    %c0_i32_1 = arith.constant 0 : i32
    return %arg0, %c0_i32, %arg1, %c0_i32_0 : i32, i32, i32, i32
  }
  func.func @transform_5(%arg0: i32, %arg1: i32) -> (i32, i32, i32, i32) {
    %c0_i32 = arith.constant 0 : i32
    %c0_i32_0 = arith.constant 0 : i32
    %c0_i32_1 = arith.constant 0 : i32
    return %arg0, %c0_i32, %arg1, %c0_i32_0 : i32, i32, i32, i32
  }
  func.func @transform_6(%arg0: i32, %arg1: i32) -> (i32, i32, i32, i32) {
    %c0_i32 = arith.constant 0 : i32
    %c0_i32_0 = arith.constant 0 : i32
    %c0_i32_1 = arith.constant 0 : i32
    return %arg0, %c0_i32, %arg1, %c0_i32_0 : i32, i32, i32, i32
  }
}

</mosaic_0001>

<bundles_post_ra>
// kernel: tpu_custom_call.1
= control target key start
LH: loop header
LB: loop body
LE: loop exit
PB: predicated region body
PF: predicated region fallthrough
CT: control target
= control target key end

     0   :  { %s3783_s0 = inlined_call_operand.hbm [shape: f32[2,256,256], index: 0, kind: input, shape index: {}]   ;;  %s3784_s1 = inlined_call_operand.hbm [shape: f32[256,768], index: 1, kind: input, shape index: {}]   ;;  %s3785_s2 = inlined_call_operand.hbm [shape: f32[256,128], index: 2, kind: input, shape index: {}]   ;;  %s3786_s3 = inlined_call_operand.hbm [shape: f32[256,128], index: 3, kind: input, shape index: {}]   ;;  %s3787_s4 = inlined_call_operand.hbm [shape: f32[2,2,256,128], index: 4, kind: output, shape index: {0}]   ;;  %s3788_s5 = inlined_call_operand.hbm [shape: f32[2,2,256,128], index: 5, kind: output, shape index: {1}]   ;;  %s3789_s6 = inlined_call_operand.hbm [shape: f32[2,2,256,128], index: 6, kind: output, shape index: {2}]  }
   0x1   :  { %3823 = sst [smem:[#allocation45_spill]] %s3783_s0 }
   0x2   :  { %3824 = sst [smem:[#allocation46_spill]] %s3784_s1 }
   0x3   :  { %3825 = sst [smem:[#allocation47_spill]] %s3785_s2 }
   0x4   :  { %3826 = sst [smem:[#allocation48_spill]] %s3787_s4 }
   0x5   :  { %3827 = sst [smem:[#allocation49_spill]] %s3788_s5 }
   0x6   :  { %3828 = sst [smem:[#allocation50_spill]] %s3789_s6 }
   0x7   :  { %12 = vsyncpa [#allocation3], 0 }
   0x8   :  { %14 = vsyncpa [#allocation3 + $0x1], 0 }
   0x9   :  { %15 = vsyncpa [#allocation6], 0 }
   0xa   :  { %16 = vsyncpa [#allocation4], 0 }
   0xb   :  { %18 = vsyncpa [#allocation4 + $0x1], 0 }
   0xc   :  { %19 = vsyncpa [#allocation11], 0 }
   0xd   :  { %21 = vsyncpa [#allocation11 + $0x1], 0  ;;  %s2705_s21 = smov 0   ;;  %s2707_s22 = smov 0  }
   0xe   :  { %s2709_s23 = smov 0   ;;  %s2711_s24 = smov 0  }
   0xf   :  { %s2713_s25 = smov 0   ;;  %s2715_s26 = smov 0  }
  0x10   :  { %s2717_s27 = smov 0   ;;  %s2719_s28 = smov 0  }
  0x11   :  { %s2721_s29 = smov 0   ;;  %s2723_s30 = smov 0  }
  0x12   :  { %s2725_s7 = smov 0  }
  0x13 LB: > { %3829 = sst [smem:[#allocation24_spill]] %s2616_s26  ;;  %s36_s8 = sadd.s32 1, %s2628_s29  ;;  %s2636_s7 = sphi %s2725_s7, %s27_s7   ;;  %s2632_s30 = sphi %s2723_s30, %s3901_s30   ;;  %s2628_s29 = sphi %s2721_s29, %s3908_s29   ;;  %s2624_s28 = sphi %s2719_s28, %s3899_s28   ;;  %s2620_s27 = sphi %s2717_s27, %s3907_s27   ;;  %s2616_s26 = sphi %s2715_s26, %s3898_s26   ;;  %s2612_s25 = sphi %s2713_s25, %s3906_s25   ;;  %s2608_s24 = sphi %s2711_s24, %s3905_s24   ;;  %s2604_s23 = sphi %s2709_s23, %s3904_s23   ;;  %s2600_s22 = sphi %s2707_s22, %s3903_s22   ;;  %s2596_s21 = sphi %s2705_s21, %s3902_s21  }
  0x14   : > { %3830 = sst [smem:[#allocation25_spill]] %s2620_s27  ;;  %s39_s9 = sadd.s32 1, %s2632_s30 }
  0x15   : > { %3831 = sst [smem:[#allocation26_spill]] %s2624_s28  ;;  %p37_p0 = scmp.ge.s32.totalorder %s36_s8, 2 }
  0x16   : > { %3832 = sst [smem:[#allocation27_spill]] %s2632_s30  ;;  %s48_s10 = sadd.s32 1, %s2616_s26 }
  0x17   : > { %p3792_p1 = scmp.ne.s32.totalorder %s2616_s26, %s2612_s25  ;;  %p3794_p2 = scmp.eq.s32.totalorder %s2636_s7, 0 }
  0x18   : > { %s3910_s8 = smov (%p37_p0, %s36_s8), 0  ;;  %s3912_s9 = smov (!%p37_p0, %s39_s9), %s2632_s30 }
  0x19   : > { %3833 = sst [smem:[#allocation28_spill]] %s3910_s8  ;;  %s2771_s11 = ssub.s32 %s2628_s29, %s3910_s8 }
  0x1a   : > { %p2778_p3 = por %p3794_p2, %p3792_p1  ;;  %p41_p4 = scmp.ge.s32.totalorder %s3912_s9, 2 }
  0x1b   : > { %p93_p5 = scmp.eq.s32.totalorder %s2771_s11, 0  ;;  %p3793_p6 = scmp.lt.s32.totalorder %s2636_s7, 4 }
  0x1c   : > { %s3914_s9 = smov (%p41_p4, %s3912_s9), 0  ;;  %s255_s13 = sand.u32 1, %s2636_s7  }
  0x1d   : > { %3835 = sst [smem:[#allocation29_spill]] %s3914_s9  ;;  %s257_s14 = sand.u32 1, %s2616_s26  }
  0x1e   : > { %s43_s15 = ssub.s32 %s2632_s30, %s3914_s9  ;;  %s1925_s17 = sshll.u32 %s257_s14, 8 }
  0x1f   : > { %s45_s16 = sor.u32 %s2771_s11, %s43_s15  ;;  %s2006_s18 = sshll.u32 %s2628_s29, 5 }
  0x20   : > { %p46_p7 = scmp.eq.s32.totalorder %s45_s16, 0  ;;  %s1928_s19 = sshll.u32 %s2632_s30, 6 }
  0x21   : > { %s266_s8 = sadd.s32 %s2006_s18, %s1928_s19  ;;  %s259_s6 = scalar_lea.vmem [#allocation2], %s1925_s17 }
  0x22   : > { %s2794_s20 = scalar_select %p46_p7, %s2616_s26, %s48_s10  }
  0x23   : > { %s269_s5 = sshll.u32 %s259_s6, 4  ;;  %s1929_s4 = sshll.u32 %s266_s8, 7  ;;  %s2796_s5 = int_to_ptr.vmem [resolvable:$true] %s269_s5 }
  0x24   : > { %3836 = sst [smem:[#allocation30_spill]] %s2794_s20  ;;  %s3837_s0 = sld [smem:[#allocation45_spill]] }
  0x25   : > { %p2807_p8 = pnand %p3793_p6, %p2778_p3  ;;  %s2811_s6 = scalar_lea.sflag [#allocation3], %s255_s13 }
  0x27   : > { %p2414_p10 = pneg %p2807_p8 }
  0x2a   : > { %s2801_s1 = scalar_lea.hbm %s3837_s0, %s1929_s4  ;;  %s2417_s28 = scalar_lea.hbm %s3837_s0, 16384 }
  0x2b   : > { %s2412_s8 = scalar_lea.hbm %s2801_s1, 4096  ;;  %p2418_p13 = scmp.lt.u32.totalorder %s2801_s1, %s3837_s0 }
  0x2c   : > { %p2413_p9 = scmp.ne.s32.totalorder %s2801_s1, %s2412_s8  ;;  %p2419_p0 = scmp.lt.u32.totalorder %s2417_s28, %s2412_s8 }
  0x2d   : > { %p2421_p4 = scmp.lt.u32.totalorder %s2412_s8, %s2801_s1 }
  0x2e   : > { %p2415_p11 = pnand %p2414_p10, %p2413_p9  ;;  %p2420_p3 = por %p2419_p0, %p2418_p13 }
  0x30   : > { %p2416_p12 = pneg %p2415_p11  ;;  %p2422_p7 = por %p2421_p4, %p2420_p3 }
  0x32   : > { %p2423_p1 = pnand %p2422_p7, %p2416_p12 }
  0x34   : > { %2426 = shalt.err (!%p2423_p1)
}
  0x35   : > { %s2427_s13 = scalar_lea.vmem %s2796_s5, 4096  ;;  %s2638_s15 = smov [#allocation2]  }
  0x36   : > { %p2428_p9 = scmp.ne.s32.totalorder %s2796_s5, %s2427_s13  ;;  %s2432_s16 = sshll.u32 %s2638_s15, 4  ;;  %s2433_s16 = int_to_ptr.vmem [resolvable:$false] %s2432_s16 }
  0x37   : > { %s2434_s17 = scalar_lea.vmem %s2433_s16, 8192  ;;  %p2435_p2 = scmp.lt.s32.totalorder %s2796_s5, %s2433_s16 }
  0x38   : > { %p2430_p11 = pnand %p2428_p9, %p2414_p10  ;;  %p2436_p13 = scmp.lt.s32.totalorder %s2434_s17, %s2427_s13 }
  0x3a   : > { %p2431_p6 = pneg %p2430_p11  ;;  %p2437_p0 = por %p2436_p13, %p2435_p2 }
  0x3c   : > { %p2438_p3 = pnand %p2437_p0, %p2431_p6 }
  0x3e   : > { %2441 = shalt.err (!%p2438_p3)
}
  0x3f   : > { %s2639_s18 = smov 256   ;;  %s2640_s19 = smov 16  }
  0x40   : > { %2274 = dma.hbm_to_vmem [thread:$0]  (!%p2807_p8), %s2801_s1, 4096, %s2796_s5, %s2811_s6, %s2639_s18, %s2639_s18, %s2640_s19  }
  0x41   : > { %s2007_s8 = sshll.u32 %s2628_s29, 11  ;;  %s95_s4 = sadd.s32 1, %s2604_s23 }
  0x42   : > { %p102_p1 = scmp.ne.s32.totalorder %s2604_s23, %s2600_s22  ;;  %p3839_p2 = scmp.eq.s32.totalorder %s2636_s7, 0 }
  0x43   : > { %s2846_s27 = scalar_select %p93_p5, %s2604_s23, %s95_s4  }
  0x44   : > { %p104_p6 = por %p102_p1, %p3839_p2  ;;  %s281_s28 = sand.u32 1, %s2604_s23  }
  0x45   : > { %s2851_s12 = sshll.u32 %s281_s28, 7  ;;  %s3840_s2 = sld [smem:[#allocation47_spill]] }
  0x46   : > { %p3841_p10 = scmp.lt.s32.totalorder %s2636_s7, 4  ;;  %s283_s5 = scalar_lea.vmem [#allocation7], %s2851_s12 }
  0x47   : > { %s290_s11 = sshll.u32 %s283_s5, 4  ;;  %s2867_s11 = int_to_ptr.vmem [resolvable:$true] %s290_s11 }
  0x48   : > { %p2862_p8 = pnand %p3841_p10, %p104_p6 }
  0x4a   : > { %s3842_s1 = scalar_select %p2862_p8, 1, 0 }
  0x4b   : > { %s2858_s15 = scalar_lea.hbm %s3840_s2, %s2007_s8  ;;  %p3795_p12 = pneg %p2862_p8 }
  0x4c   : > { %s2442_s10 = scalar_lea.hbm %s2858_s15, 2048  ;;  %s2447_s18 = scalar_lea.hbm %s3840_s2, 4096 }
  0x4d   : > { %p2443_p5 = scmp.ne.s32.totalorder %s2858_s15, %s2442_s10  ;;  %p2448_p9 = scmp.lt.u32.totalorder %s2858_s15, %s3840_s2 }
  0x4e   : > { %p2449_p11 = scmp.lt.u32.totalorder %s2447_s18, %s2442_s10  ;;  %p2451_p0 = scmp.lt.u32.totalorder %s2442_s10, %s2858_s15 }
  0x4f   : > { %p2445_p4 = pnand %p3795_p12, %p2443_p5 }
  0x50   : > { %p2450_p13 = por %p2449_p11, %p2448_p9 }
  0x51   : > { %p2446_p7 = pneg %p2445_p4 }
  0x52   : > { %p2452_p3 = por %p2451_p0, %p2450_p13 }
  0x54   : > { %p2453_p1 = pnand %p2452_p3, %p2446_p7 }
  0x56   : > { %2456 = shalt.err (!%p2453_p1)
}
  0x57   : > { %s2457_s28 = scalar_lea.vmem %s2867_s11, 2048  ;;  %s2641_s14 = smov [#allocation7]  }
  0x58   : > { %p2458_p2 = scmp.ne.s32.totalorder %s2867_s11, %s2457_s28  ;;  %s2462_s13 = sshll.u32 %s2641_s14, 4  ;;  %s2463_s13 = int_to_ptr.vmem [resolvable:$false] %s2462_s13 }
  0x59   : > { %s2464_s5 = scalar_lea.vmem %s2463_s13, 4096  ;;  %p2465_p5 = scmp.lt.s32.totalorder %s2867_s11, %s2463_s13 }
  0x5a   : > { %p2460_p6 = pnand %p2458_p2, %p3795_p12  ;;  %p2466_p4 = scmp.lt.s32.totalorder %s2464_s5, %s2457_s28 }
  0x5c   : > { %p2461_p10 = pneg %p2460_p6  ;;  %p2467_p9 = por %p2466_p4, %p2465_p5 }
  0x5e   : > { %p2468_p11 = pnand %p2467_p9, %p2461_p10 }
  0x60   : > { %2471 = shalt.err (!%p2468_p11)
}
  0x61   : > { %s3797_s10 = smov 128   ;;  %s3798_s16 = smov 8  }
  0x62   : > { %2277 = dma.hbm_to_vmem [thread:$0]  (!%p2862_p8), %s2858_s15, 2048, %s2867_s11, %s2811_s6, %s3797_s10, %s3797_s10, %s3798_s16  }
  0x63   : > { %s2899_s17 = sadd.s32 4294967295, %s2636_s7   ;;  %s3796_s18 = sadd.s32 4294967294, %s2636_s7  }
  0x64   : > { %p61_p7 = scmp.ne.s32.totalorder %s2612_s25, %s2608_s24  ;;  %p3802_p13 = scmp.eq.s32.totalorder %s2899_s17, 0 }
  0x65   : > { %p108_p0 = scmp.ne.s32.totalorder %s2600_s22, %s2596_s21  ;;  %p160_p3 = scmp.eq.s32.totalorder %s2899_s17, 3 }
  0x66   : > { %p166_p1 = scmp.eq.s32.totalorder %s3796_s18, 3  ;;  %p2912_p2 = por %p3802_p13, %p61_p7 }
  0x67   : > { %p2918_p6 = por %p108_p0, %p3802_p13  ;;  %p3845_p10 = scmp.ne.s32.totalorder %s2616_s26, %s2612_s25 }
  0x68   : > { %s3843_s19 = scalar_select %p2912_p2, 1, 0 }
  0x69   : > { %s3844_s15 = scalar_select %p2918_p6, 1, 0 }
  0x6a   : > { %p2925_p5 = por %p160_p3, %p3845_p10  ;;  %p2929_p4 = por %p166_p1, %p61_p7 }
  0x6b   : > { %p1922_p9 = scmp.ge.s32.totalorder %s2636_s7, 1  ;;  %p229_p11 = scmp.lt.s32.totalorder %s2636_s7, 5 }
  0x6c   : > { %s3846_s11 = scalar_select %p2925_p5, 1, 0 }
  0x6d   : > { %s3847_s21 = scalar_select %p2929_p4, 1, 0 }
  0x6e   : > { %p2935_p12 = pnand %p1922_p9, %p229_p11  ;;  %s2644_s28 = smov [#allocation5]  }
  0x6f   : > { %s241_s14 = sshll.u32 %s2644_s28, 4  ;;  %s304_s5 = scalar_lea.vmem [#allocation8], %s2851_s12  ;;  %s2939_s14 = int_to_ptr.vmem [resolvable:$true] %s241_s14 }
  0x70   : > { %s3848_s4 = scalar_select %p2935_p12, 1, 0 }
  0x71   : > { %p2267_p0 = pneg %p2935_p12  ;;  %s311_s18 = sshll.u32 %s304_s5, 4  ;;  %s2957_s18 = int_to_ptr.vmem [resolvable:$true] %s311_s18 }
  0x72   : > { %s2955_s0 = scalar_lea.hbm %s3786_s3, %s2007_s8  ;;  %s3850_s9 = sld [smem:[#allocation46_spill]] }
  0x73   : > { %p2945_p3 = pnand %p2267_p0, %p3802_p13 }
  0x75   : > { %p2474_p1 = pneg %p2945_p3 }
  0x78   : > { %s2472_s30 = scalar_lea.hbm %s3850_s9, 24576 }
  0x79   : > { %p2473_p7 = scmp.ne.s32.totalorder %s3850_s9, %s2472_s30  ;;  %p2479_p11 = scmp.lt.u32.totalorder %s2472_s30, %s3850_s9 }
  0x7b   : > { %p2475_p10 = pnand %p2474_p1, %p2473_p7 }
  0x7d   : > { %p2476_p9 = pneg %p2475_p10 }
  0x7f   : > { %p2481_p0 = pnand %p2479_p11, %p2476_p9 }
  0x81   : > { %2484 = shalt.err (!%p2481_p0)
}
  0x82   : > { %s2485_s8 = scalar_lea.vmem %s2939_s14, 24576  ;;  %p2493_p6 = scmp.lt.s32.totalorder %s2939_s14, %s2939_s14 }
  0x83   : > { %p2486_p13 = scmp.ne.s32.totalorder %s2939_s14, %s2485_s8  ;;  %p2494_p2 = scmp.lt.s32.totalorder %s2485_s8, %s2485_s8 }
  0x85   : > { %p2488_p4 = pnand %p2486_p13, %p2474_p1  ;;  %p2495_p12 = por %p2494_p2, %p2493_p6 }
  0x87   : > { %p2489_p5 = pneg %p2488_p4 }
  0x89   : > { %p2496_p8 = pnand %p2495_p12, %p2489_p5 }
  0x8b   : > { %2499 = shalt.err (!%p2496_p8)
}
  0x8c   : > { %s2645_s2 = smov 768   ;;  %s2646_s26 = smov 48  }
  0x8d   : > { %2270 = dma.hbm_to_vmem [thread:$0]  (!%p2945_p3), %s3850_s9, 24576, %s2939_s14, [#allocation6], %s2645_s2, %s2645_s2, %s2646_s26  }
  0x8e   : > { %s2500_s10 = scalar_lea.hbm %s2955_s0, 2048  ;;  %p3851_p4 = scmp.ne.s32.totalorder %s3842_s1, 0 }
  0x8f   : > { %p2501_p13 = scmp.ne.s32.totalorder %s2955_s0, %s2500_s10  ;;  %s2505_s12 = scalar_lea.hbm %s3786_s3, 4096 }
  0x90   : > { %p3852_p2 = pneg %p3851_p4  ;;  %p2506_p6 = scmp.lt.u32.totalorder %s2955_s0, %s3786_s3 }
  0x91   : > { %p2507_p5 = scmp.lt.u32.totalorder %s2505_s12, %s2500_s10  ;;  %p2509_p1 = scmp.lt.u32.totalorder %s2500_s10, %s2955_s0 }
  0x92   : > { %p2503_p12 = pnand %p2501_p13, %p3852_p2 }
  0x93   : > { %p2508_p7 = por %p2507_p5, %p2506_p6 }
  0x94   : > { %p2504_p8 = pneg %p2503_p12 }
  0x95   : > { %p2510_p10 = por %p2509_p1, %p2508_p7 }
  0x97   : > { %p2511_p9 = pnand %p2510_p10, %p2504_p8 }
  0x99   : > { %2514 = shalt.err (!%p2511_p9)
}
  0x9a   : > { %s2515_s14 = scalar_lea.vmem %s2957_s18, 2048  ;;  %p3853_p11 = pmov %p3852_p2 }
  0x9b   : > { %p2516_p3 = scmp.ne.s32.totalorder %s2957_s18, %s2515_s14  ;;  %s2647_s13 = smov [#allocation8]  }
  0x9c   : > { %s2520_s2 = sshll.u32 %s2647_s13, 4  ;;  %s2521_s2 = int_to_ptr.vmem [resolvable:$false] %s2520_s2 }
  0x9d   : > { %p2518_p0 = pnand %p2516_p3, %p3853_p11  ;;  %s2522_s26 = scalar_lea.vmem %s2521_s2, 4096 }
  0x9e   : > { %p2523_p2 = scmp.lt.s32.totalorder %s2957_s18, %s2521_s2  ;;  %p2524_p12 = scmp.lt.s32.totalorder %s2522_s26, %s2515_s14 }
  0x9f   : > { %p2519_p13 = pneg %p2518_p0 }
  0xa0   : > { %p2525_p6 = por %p2524_p12, %p2523_p2 }
  0xa2   : > { %p2526_p5 = pnand %p2525_p6, %p2519_p13 }
  0xa4   : > { %2529 = shalt.err (!%p2526_p5)
}
  0xa5   : > { %s3854_s30 = smov 8   ;;  %s3855_s20 = smov 128  }
  0xa6   : > { %2280 = dma.hbm_to_vmem [thread:$0]  (!%p3851_p4), %s2955_s0, 2048, %s2957_s18, %s2811_s6, %s3855_s20, %s3855_s20, %s3854_s30  }
  0xa7   : > { %p3856_p8 = scmp.ne.s32.totalorder %s3848_s4, 0 }
  0xa9   : > { %323 = sbr.rel (%p3856_p8) target bundleno = 748 (0x2ec), region = 36 }
  0xb0   : > { %s325_s10 = sand.u32 1, %s2899_s17   ;;  %s327_s16 = sand.u32 1, %s2612_s25  }
  0xb1   : > { %s3013_s28 = sshll.u32 %s327_s16, 8  ;;  %s326_s1 = scalar_lea.sflag [#allocation3], %s325_s10 }
  0xb2   : > { %s3018_s12 = scalar_lea.vmem [#allocation2], %s3013_s28  ;;  %p3857_p7 = scmp.ne.s32.totalorder %s3843_s19, 0 }
  0xb4   : > { %2575 = dma.done.wait (%p3857_p7), %s326_s1, 4096  }
  0xb5   : > { %2577 = vsyncadd (%p3857_p7), %s326_s1, 4294963200  ;;  %p3858_p4 = scmp.eq.s32.totalorder %s2899_s17, 0 }
  0xb7   : > { %2579 = dma.done.wait (%p3858_p4), [#allocation6], 24576   ;;  %p3859_p1 = pmov %p3858_p4 }
  0xb8   : > { %s340_s0 = sand.u32 1, %s2600_s22   ;;  %p3860_p10 = scmp.ne.s32.totalorder %s3844_s15, 0 }
  0xb9   : > { %2581 = vsyncadd (%p3859_p1), [#allocation6], 4294942720  ;;  %s3029_s6 = sshll.u32 %s340_s0, 7 }
  0xba   : > { %s3032_s18 = scalar_lea.vmem [#allocation7], %s3029_s6 }
  0xbb   : > { %2583 = dma.done.wait (%p3860_p10), %s326_s1, 4096  }
  0xbc   : > { %2585 = vsyncadd (%p3860_p10), %s326_s1, 4294963200  ;;  %v439_v0 = vld [vmem:[#allocation5 + $0x8] sm:$0xff]  ;;  %v445_v1 = vld [vmem:[#allocation5 + $0x38] sm:$0xff]  ;;  %s2648_s19 = smov 64   ;;  %s3434_s15 = scalar_lea.vmem [#allocation12], %s3013_s28 }
  0xbd   : > { %v441_v2 = vld [vmem:[#allocation5 + $0x18] sm:$0xff]  ;;  %v2009_v3 = vpack.c.bf16 %v445_v1, %v439_v0  ;;  %v447_v4 = vld [vmem:[#allocation5 + $0x48] sm:$0xff]  ;;  %v438_v5 = vld [vmem:[#allocation5] sm:$0xff]  ;;  %s3483_s4 = scalar_lea.vmem [#allocation8], %s3029_s6  ;;  %s3504_s5 = scalar_lea.vmem [#allocation9], %s3013_s28 }
  0xbe   : > { %v444_v6 = vld [vmem:[#allocation5 + $0x30] sm:$0xff]  ;;  %v2073_v7 = vpack.c.bf16 %v447_v4, %v441_v2  ;;  %v446_v10 = vld [vmem:[#allocation5 + $0x40] sm:$0xff]  ;;  %v451_v11 = vld [vmem:[#allocation5 + $0x68] sm:$0xff]  ;;  %s3516_s8 = scalar_lea.vmem [#allocation10], %s3013_s28  ;;  %s1565_s14 = scalar_lea.sflag [#allocation4], %s327_s16 }
  0xbf   : > { %v2011_v8 = vpack.c.bf16 %v444_v6, %v438_v5  ;;  %v440_v9 = vld [vmem:[#allocation5 + $0x10] sm:$0xff]  ;;  %2010 = vmatprep.subr.bf16.mxu0 %v2009_v3  ;;  %v457_v13 = vld [vmem:[#allocation5 + $0x98] sm:$0xff]  ;;  %v459_v15 = vld [vmem:[#allocation5 + $0xa8] sm:$0xff]  ;;  %s3679_s13 = scalar_lea.sflag [#allocation11], %s325_s10 }
  0xc0   : > { %v2075_v12 = vpack.c.bf16 %v446_v10, %v440_v9  ;;  %v453_v14 = vld [vmem:[#allocation5 + $0x78] sm:$0xff]  ;;  %2074 = vmatprep.subr.bf16.mxu1 %v2073_v7  ;;  %v2013_v16 = vpack.c.bf16 %v457_v13, %v451_v11  ;;  %v450_v18 = vld [vmem:[#allocation5 + $0x60] sm:$0xff]  ;;  %v456_v19 = vld [vmem:[#allocation5 + $0x90] sm:$0xff] }
  0xc1   : > { %2012 = vmatpush1.bf16.msra.mxu0 %v2011_v8  ;;  %v2077_v17 = vpack.c.bf16 %v459_v15, %v453_v14  ;;  %v452_v20 = vld [vmem:[#allocation5 + $0x70] sm:$0xff]  ;;  %v2015_v21 = vpack.c.bf16 %v456_v19, %v450_v18  ;;  %v458_v22 = vld [vmem:[#allocation5 + $0xa0] sm:$0xff]  ;;  %v463_v23 = vld [vmem:[#allocation5 + $0xc8] sm:$0xff] }
  0xc2   : > { %2076 = vmatpush1.bf16.msra.mxu1 %v2075_v12  ;;  %v469_v24 = vld [vmem:[#allocation5 + $0xf8] sm:$0xff]  ;;  %2014 = vmatprep.subr.bf16.mxu0 %v2013_v16  ;;  %v2079_v25 = vpack.c.bf16 %v458_v22, %v452_v20  ;;  %v471_v28 = vld [vmem:[#allocation5 + $0x108] sm:$0xff]  ;;  %v462_v29 = vld [vmem:[#allocation5 + $0xc0] sm:$0xff] }
  0xc3   : > { %2078 = vmatprep.subr.bf16.mxu1 %v2077_v17  ;;  %v2017_v26 = vpack.c.bf16 %v469_v24, %v463_v23  ;;  %v465_v27 = vld [vmem:[#allocation5 + $0xd8] sm:$0xff]  ;;  %v468_v31 = vld [vmem:[#allocation5 + $0xf0] sm:$0xff]  ;;  %v470_v33 = vld [vmem:[#allocation5 + $0x100] sm:$0xff] }
  0xc4   : > { %v2081_v30 = vpack.c.bf16 %v471_v28, %v465_v27  ;;  %v464_v32 = vld [vmem:[#allocation5 + $0xd0] sm:$0xff]  ;;  %v2019_v34 = vpack.c.bf16 %v468_v31, %v462_v29  ;;  %v475_v35 = vld [vmem:[#allocation5 + $0x128] sm:$0xff]  ;;  %v481_v36 = vld [vmem:[#allocation5 + $0x158] sm:$0xff] }
  0xc5   : > { %2016 = vmatpush1.bf16.msra.mxu0 %v2015_v21  ;;  %v477_v37 = vld [vmem:[#allocation5 + $0x138] sm:$0xff]  ;;  %v2083_v38 = vpack.c.bf16 %v470_v33, %v464_v32  ;;  %v2021_v39 = vpack.c.bf16 %v481_v36, %v475_v35  ;;  %v483_v40 = vld [vmem:[#allocation5 + $0x168] sm:$0xff]  ;;  %v474_v41 = vld [vmem:[#allocation5 + $0x120] sm:$0xff] }
  0xc6   : > { %2080 = vmatpush1.bf16.msra.mxu1 %v2079_v25  ;;  %2018 = vmatprep.subr.bf16.mxu0 %v2017_v26  ;;  %v480_v42 = vld [vmem:[#allocation5 + $0x150] sm:$0xff]  ;;  %v2085_v43 = vpack.c.bf16 %v483_v40, %v477_v37  ;;  %v482_v45 = vld [vmem:[#allocation5 + $0x160] sm:$0xff]  ;;  %v487_v46 = vld [vmem:[#allocation5 + $0x188] sm:$0xff] }
  0xc7   : > { %2082 = vmatprep.subr.bf16.mxu1 %v2081_v30  ;;  %v476_v44 = vld [vmem:[#allocation5 + $0x130] sm:$0xff]  ;;  %v493_v47 = vld [vmem:[#allocation5 + $0x1b8] sm:$0xff]  ;;  %v495_v49 = vld [vmem:[#allocation5 + $0x1c8] sm:$0xff]  ;;  %v2023_v50 = vpack.c.bf16 %v480_v42, %v474_v41 }
  0xc8   : > { %v489_v48 = vld [vmem:[#allocation5 + $0x198] sm:$0xff]  ;;  %v2087_v51 = vpack.c.bf16 %v482_v45, %v476_v44  ;;  %v2025_v52 = vpack.c.bf16 %v493_v47, %v487_v46  ;;  %v486_v53 = vld [vmem:[#allocation5 + $0x180] sm:$0xff]  ;;  %v492_v54 = vld [vmem:[#allocation5 + $0x1b0] sm:$0xff] }
  0xc9   : > { %2020 = vmatpush1.bf16.msra.mxu0 %v2019_v34  ;;  %v488_v55 = vld [vmem:[#allocation5 + $0x190] sm:$0xff]  ;;  %v2089_v56 = vpack.c.bf16 %v495_v49, %v489_v48  ;;  %v494_v57 = vld [vmem:[#allocation5 + $0x1c0] sm:$0xff]  ;;  %v499_v58 = vld [vmem:[#allocation5 + $0x1e8] sm:$0xff]  ;;  %v2027_v62 = vpack.c.bf16 %v492_v54, %v486_v53 }
  0xca   : > { %2084 = vmatpush1.bf16.msra.mxu1 %v2083_v38  ;;  %2022 = vmatprep.subr.bf16.mxu0 %v2021_v39  ;;  %v505_v59 = vld [vmem:[#allocation5 + $0x218] sm:$0xff]  ;;  %v507_v61 = vld [vmem:[#allocation5 + $0x228] sm:$0xff]  ;;  %v2091_v63 = vpack.c.bf16 %v494_v57, %v488_v55  ;;  %v498_v1 = vld [vmem:[#allocation5 + $0x1e0] sm:$0xff] }
  0xcb   : > { %2086 = vmatprep.subr.bf16.mxu1 %v2085_v43  ;;  %v501_v60 = vld [vmem:[#allocation5 + $0x1f8] sm:$0xff]  ;;  %v2029_v0 = vpack.c.bf16 %v505_v59, %v499_v58  ;;  %v504_v2 = vld [vmem:[#allocation5 + $0x210] sm:$0xff]  ;;  %v506_v5 = vld [vmem:[#allocation5 + $0x220] sm:$0xff] }
  0xcc   : > { %v500_v3 = vld [vmem:[#allocation5 + $0x1f0] sm:$0xff]  ;;  %v2093_v4 = vpack.c.bf16 %v507_v61, %v501_v60  ;;  %v511_v6 = vld [vmem:[#allocation5 + $0x248] sm:$0xff]  ;;  %v517_v7 = vld [vmem:[#allocation5 + $0x278] sm:$0xff]  ;;  %v2031_v10 = vpack.c.bf16 %v504_v2, %v498_v1 }
  0xcd   : > { %2024 = vmatpush1.bf16.msra.mxu0 %v2023_v50  ;;  %v513_v8 = vld [vmem:[#allocation5 + $0x258] sm:$0xff]  ;;  %v519_v9 = vld [vmem:[#allocation5 + $0x288] sm:$0xff]  ;;  %v2095_v11 = vpack.c.bf16 %v506_v5, %v500_v3  ;;  %v2033_v12 = vpack.c.bf16 %v517_v7, %v511_v6  ;;  %v510_v13 = vld [vmem:[#allocation5 + $0x240] sm:$0xff] }
  0xce   : > { %2088 = vmatpush1.bf16.msra.mxu1 %v2087_v51  ;;  %2026 = vmatprep.subr.bf16.mxu0 %v2025_v52  ;;  %v516_v14 = vld [vmem:[#allocation5 + $0x270] sm:$0xff]  ;;  %v2097_v16 = vpack.c.bf16 %v519_v9, %v513_v8  ;;  %v518_v17 = vld [vmem:[#allocation5 + $0x280] sm:$0xff]  ;;  %v523_v18 = vld [vmem:[#allocation5 + $0x2a8] sm:$0xff] }
  0xcf   : > { %2090 = vmatprep.subr.bf16.mxu1 %v2089_v56  ;;  %v512_v15 = vld [vmem:[#allocation5 + $0x250] sm:$0xff]  ;;  %v529_v19 = vld [vmem:[#allocation5 + $0x2d8] sm:$0xff]  ;;  %v531_v21 = vld [vmem:[#allocation5 + $0x2e8] sm:$0xff]  ;;  %v2035_v22 = vpack.c.bf16 %v516_v14, %v510_v13 }
  0xd0   : > { %v525_v20 = vld [vmem:[#allocation5 + $0x2b8] sm:$0xff]  ;;  %v2099_v23 = vpack.c.bf16 %v518_v17, %v512_v15  ;;  %v2037_v24 = vpack.c.bf16 %v529_v19, %v523_v18  ;;  %v522_v25 = vld [vmem:[#allocation5 + $0x2a0] sm:$0xff]  ;;  %v528_v26 = vld [vmem:[#allocation5 + $0x2d0] sm:$0xff] }
  0xd1   : > { %2028 = vmatpush1.bf16.msra.mxu0 %v2027_v62  ;;  %v524_v27 = vld [vmem:[#allocation5 + $0x2b0] sm:$0xff]  ;;  %v2101_v28 = vpack.c.bf16 %v531_v21, %v525_v20  ;;  %v530_v29 = vld [vmem:[#allocation5 + $0x2e0] sm:$0xff]  ;;  %v535_v30 = vld [vmem:[#allocation5 + $0x308] sm:$0xff]  ;;  %v2039_v34 = vpack.c.bf16 %v528_v26, %v522_v25 }
  0xd2   : > { %2092 = vmatpush1.bf16.msra.mxu1 %v2091_v63  ;;  %2030 = vmatprep.subr.bf16.mxu0 %v2029_v0  ;;  %v541_v31 = vld [vmem:[#allocation5 + $0x338] sm:$0xff]  ;;  %v543_v33 = vld [vmem:[#allocation5 + $0x348] sm:$0xff]  ;;  %v2103_v35 = vpack.c.bf16 %v530_v29, %v524_v27  ;;  %v534_v37 = vld [vmem:[#allocation5 + $0x300] sm:$0xff] }
  0xd3   : > { %2094 = vmatprep.subr.bf16.mxu1 %v2093_v4  ;;  %v537_v32 = vld [vmem:[#allocation5 + $0x318] sm:$0xff]  ;;  %v2041_v36 = vpack.c.bf16 %v541_v31, %v535_v30  ;;  %v540_v38 = vld [vmem:[#allocation5 + $0x330] sm:$0xff]  ;;  %v542_v41 = vld [vmem:[#allocation5 + $0x340] sm:$0xff] }
  0xd4   : > { %v536_v39 = vld [vmem:[#allocation5 + $0x310] sm:$0xff]  ;;  %v2105_v40 = vpack.c.bf16 %v543_v33, %v537_v32  ;;  %v547_v42 = vld [vmem:[#allocation5 + $0x368] sm:$0xff]  ;;  %v553_v43 = vld [vmem:[#allocation5 + $0x398] sm:$0xff]  ;;  %v2043_v46 = vpack.c.bf16 %v540_v38, %v534_v37 }
  0xd5   : > { %2032 = vmatpush1.bf16.msra.mxu0 %v2031_v10  ;;  %v549_v44 = vld [vmem:[#allocation5 + $0x378] sm:$0xff]  ;;  %v555_v45 = vld [vmem:[#allocation5 + $0x3a8] sm:$0xff]  ;;  %v2107_v47 = vpack.c.bf16 %v542_v41, %v536_v39  ;;  %v2045_v48 = vpack.c.bf16 %v553_v43, %v547_v42  ;;  %v546_v49 = vld [vmem:[#allocation5 + $0x360] sm:$0xff] }
  0xd6   : > { %2096 = vmatpush1.bf16.msra.mxu1 %v2095_v11  ;;  %2034 = vmatprep.subr.bf16.mxu0 %v2033_v12  ;;  %v552_v50 = vld [vmem:[#allocation5 + $0x390] sm:$0xff]  ;;  %v2109_v52 = vpack.c.bf16 %v555_v45, %v549_v44  ;;  %v554_v53 = vld [vmem:[#allocation5 + $0x3a0] sm:$0xff]  ;;  %v559_v54 = vld [vmem:[#allocation5 + $0x3c8] sm:$0xff] }
  0xd7   : > { %2098 = vmatprep.subr.bf16.mxu1 %v2097_v16  ;;  %v548_v51 = vld [vmem:[#allocation5 + $0x370] sm:$0xff]  ;;  %v565_v55 = vld [vmem:[#allocation5 + $0x3f8] sm:$0xff]  ;;  %v567_v57 = vld [vmem:[#allocation5 + $0x408] sm:$0xff]  ;;  %v2047_v58 = vpack.c.bf16 %v552_v50, %v546_v49 }
  0xd8   : > { %v561_v56 = vld [vmem:[#allocation5 + $0x3d8] sm:$0xff]  ;;  %v2111_v59 = vpack.c.bf16 %v554_v53, %v548_v51  ;;  %v2049_v60 = vpack.c.bf16 %v565_v55, %v559_v54  ;;  %v558_v61 = vld [vmem:[#allocation5 + $0x3c0] sm:$0xff]  ;;  %v564_v62 = vld [vmem:[#allocation5 + $0x3f0] sm:$0xff] }
  0xd9   : > { %2036 = vmatpush1.bf16.msra.mxu0 %v2035_v22  ;;  %v560_v63 = vld [vmem:[#allocation5 + $0x3d0] sm:$0xff]  ;;  %v2113_v0 = vpack.c.bf16 %v567_v57, %v561_v56  ;;  %v566_v1 = vld [vmem:[#allocation5 + $0x400] sm:$0xff]  ;;  %v571_v2 = vld [vmem:[#allocation5 + $0x428] sm:$0xff]  ;;  %v2051_v6 = vpack.c.bf16 %v564_v62, %v558_v61 }
  0xda   : > { %2100 = vmatpush1.bf16.msra.mxu1 %v2099_v23  ;;  %2038 = vmatprep.subr.bf16.mxu0 %v2037_v24  ;;  %v577_v3 = vld [vmem:[#allocation5 + $0x458] sm:$0xff]  ;;  %v579_v5 = vld [vmem:[#allocation5 + $0x468] sm:$0xff]  ;;  %v570_v7 = vld [vmem:[#allocation5 + $0x420] sm:$0xff]  ;;  %v2115_v8 = vpack.c.bf16 %v566_v1, %v560_v63 }
  0xdb   : > { %2102 = vmatprep.subr.bf16.mxu1 %v2101_v28  ;;  %v573_v4 = vld [vmem:[#allocation5 + $0x438] sm:$0xff]  ;;  %v2053_v9 = vpack.c.bf16 %v577_v3, %v571_v2  ;;  %v576_v10 = vld [vmem:[#allocation5 + $0x450] sm:$0xff]  ;;  %v578_v12 = vld [vmem:[#allocation5 + $0x460] sm:$0xff] }
  0xdc   : > { %v572_v11 = vld [vmem:[#allocation5 + $0x430] sm:$0xff]  ;;  %v2117_v13 = vpack.c.bf16 %v579_v5, %v573_v4  ;;  %v583_v14 = vld [vmem:[#allocation5 + $0x488] sm:$0xff]  ;;  %v589_v15 = vld [vmem:[#allocation5 + $0x4b8] sm:$0xff]  ;;  %v2055_v19 = vpack.c.bf16 %v576_v10, %v570_v7 }
  0xdd   : > { %2040 = vmatpush1.bf16.msra.mxu0 %v2039_v34  ;;  %v3039_v16 = vld [vmem:[%s3018_s12 + $0x8] sm:$0xff]  ;;  %v585_v17 = vld [vmem:[#allocation5 + $0x498] sm:$0xff]  ;;  %v2119_v20 = vpack.c.bf16 %v578_v12, %v572_v11  ;;  %v2057_v21 = vpack.c.bf16 %v589_v15, %v583_v14  ;;  %v582_v22 = vld [vmem:[#allocation5 + $0x480] sm:$0xff] }
  0xde   : > { %2104 = vmatpush1.bf16.msra.mxu1 %v2103_v35  ;;  %2042 = vmatprep.subr.bf16.mxu0 %v2041_v36  ;;  %v591_v18 = vld [vmem:[#allocation5 + $0x4c8] sm:$0xff]  ;;  %v588_v23 = vld [vmem:[#allocation5 + $0x4b0] sm:$0xff]  ;;  %v590_v26 = vld [vmem:[#allocation5 + $0x4c0] sm:$0xff] }
  0xdf   : > { %2106 = vmatprep.subr.bf16.mxu1 %v2105_v40  ;;  %694 = vmatprep.mubr.f32.mxu0 %v3039_v16  ;;  %v584_v24 = vld [vmem:[#allocation5 + $0x490] sm:$0xff]  ;;  %v2121_v25 = vpack.c.bf16 %v591_v18, %v585_v17  ;;  %v595_v27 = vld [vmem:[#allocation5 + $0x4e8] sm:$0xff]  ;;  %v601_v28 = vld [vmem:[#allocation5 + $0x518] sm:$0xff]  ;;  %v2059_v31 = vpack.c.bf16 %v588_v23, %v582_v22 }
  0xe0   : > { %855 = vmatprep.mubr.f32.mxu1 %v3039_v16  ;;  %v597_v29 = vld [vmem:[#allocation5 + $0x4f8] sm:$0xff]  ;;  %v603_v30 = vld [vmem:[#allocation5 + $0x528] sm:$0xff]  ;;  %v2123_v32 = vpack.c.bf16 %v590_v26, %v584_v24  ;;  %v2061_v33 = vpack.c.bf16 %v601_v28, %v595_v27  ;;  %v594_v34 = vld [vmem:[#allocation5 + $0x4e0] sm:$0xff] }
  0xe1   : > { %2044 = vmatpush1.bf16.msra.mxu0 %v2043_v46  ;;  %v600_v35 = vld [vmem:[#allocation5 + $0x510] sm:$0xff]  ;;  %v2125_v37 = vpack.c.bf16 %v603_v30, %v597_v29  ;;  %v602_v38 = vld [vmem:[#allocation5 + $0x520] sm:$0xff]  ;;  %v607_v39 = vld [vmem:[#allocation5 + $0x548] sm:$0xff] }
  0xe2   : > { %2108 = vmatpush1.bf16.msra.mxu1 %v2107_v47  ;;  %2046 = vmatprep.subr.bf16.mxu0 %v2045_v48  ;;  %v596_v36 = vld [vmem:[#allocation5 + $0x4f0] sm:$0xff]  ;;  %v613_v40 = vld [vmem:[#allocation5 + $0x578] sm:$0xff]  ;;  %v615_v42 = vld [vmem:[#allocation5 + $0x588] sm:$0xff]  ;;  %v2063_v43 = vpack.c.bf16 %v600_v35, %v594_v34 }
  0xe3   : > { %2110 = vmatprep.subr.bf16.mxu1 %v2109_v52  ;;  %v609_v41 = vld [vmem:[#allocation5 + $0x558] sm:$0xff]  ;;  %v2127_v44 = vpack.c.bf16 %v602_v38, %v596_v36  ;;  %v2065_v45 = vpack.c.bf16 %v613_v40, %v607_v39  ;;  %v606_v46 = vld [vmem:[#allocation5 + $0x540] sm:$0xff]  ;;  %v612_v47 = vld [vmem:[#allocation5 + $0x570] sm:$0xff] }
  0xe4   : > { %v608_v48 = vld [vmem:[#allocation5 + $0x550] sm:$0xff]  ;;  %v2129_v49 = vpack.c.bf16 %v615_v42, %v609_v41  ;;  %v614_v50 = vld [vmem:[#allocation5 + $0x580] sm:$0xff]  ;;  %v619_v51 = vld [vmem:[#allocation5 + $0x5a8] sm:$0xff]  ;;  %v2067_v55 = vpack.c.bf16 %v612_v47, %v606_v46 }
  0xe5   : > { %2048 = vmatpush1.bf16.msra.mxu0 %v2047_v58  ;;  %v625_v52 = vld [vmem:[#allocation5 + $0x5d8] sm:$0xff]  ;;  %v627_v54 = vld [vmem:[#allocation5 + $0x5e8] sm:$0xff]  ;;  %v2131_v56 = vpack.c.bf16 %v614_v50, %v608_v48  ;;  %v618_v58 = vld [vmem:[#allocation5 + $0x5a0] sm:$0xff] }
  0xe6   : > { %2112 = vmatpush1.bf16.msra.mxu1 %v2111_v59  ;;  %2050 = vmatprep.subr.bf16.mxu0 %v2049_v60  ;;  %v621_v53 = vld [vmem:[#allocation5 + $0x5b8] sm:$0xff]  ;;  %v2069_v57 = vpack.c.bf16 %v625_v52, %v619_v51  ;;  %v624_v59 = vld [vmem:[#allocation5 + $0x5d0] sm:$0xff]  ;;  %v626_v62 = vld [vmem:[#allocation5 + $0x5e0] sm:$0xff] }
  0xe7   : > { %2114 = vmatprep.subr.bf16.mxu1 %v2113_v0  ;;  %v620_v60 = vld [vmem:[#allocation5 + $0x5b0] sm:$0xff]  ;;  %v2133_v61 = vpack.c.bf16 %v627_v54, %v621_v53  ;;  %v443_v63 = vld [vmem:[#allocation5 + $0x28] sm:$0xff]  ;;  %v449_v0 = vld [vmem:[#allocation5 + $0x58] sm:$0xff]  ;;  %v2071_v1 = vpack.c.bf16 %v624_v59, %v618_v58 }
  0xe8   : > { %v2135_v2 = vpack.c.bf16 %v626_v62, %v620_v60  ;;  %v2137_v3 = vpack.c.bf16 %v449_v0, %v443_v63  ;;  %v442_v4 = vld [vmem:[#allocation5 + $0x20] sm:$0xff]  ;;  %v448_v5 = vld [vmem:[#allocation5 + $0x50] sm:$0xff]  ;;  %v461_v7 = vld [vmem:[#allocation5 + $0xb8] sm:$0xff] }
  0xe9   : > { %2052 = vmatpush1.bf16.msra.mxu0 %v2051_v6  ;;  %v455_v6 = vld [vmem:[#allocation5 + $0x88] sm:$0xff]  ;;  %v3047_v10 = vld [vmem:[%s3018_s12 + $0x18] sm:$0xff]  ;;  %v454_v12 = vld [vmem:[#allocation5 + $0x80] sm:$0xff] }
  0xea   : > { %2116 = vmatpush1.bf16.msra.mxu1 %v2115_v8  ;;  %2054 = vmatprep.subr.bf16.mxu0 %v2053_v9  ;;  %v3044_v8 = vld [vmem:[%s3018_s12] sm:$0xff]  ;;  %v2139_v9 = vpack.c.bf16 %v448_v5, %v442_v4  ;;  %v2141_v11 = vpack.c.bf16 %v461_v7, %v455_v6  ;;  %v467_v14 = vld [vmem:[#allocation5 + $0xe8] sm:$0xff]  ;;  %v473_v15 = vld [vmem:[#allocation5 + $0x118] sm:$0xff] }
  0xeb   : > { %2118 = vmatprep.subr.bf16.mxu1 %v2117_v13  ;;  %v460_v13 = vld [vmem:[#allocation5 + $0xb0] sm:$0xff]  ;;  %v3057_v18 = vld [vmem:[%s3018_s12 + $0x28] sm:$0xff]  ;;  %v485_v24 = vld [vmem:[#allocation5 + $0x178] sm:$0xff] }
  0xec   : > { %v3054_v17 = vld [vmem:[%s3018_s12 + $0x10] sm:$0xff]  ;;  %v479_v23 = vld [vmem:[#allocation5 + $0x148] sm:$0xff]  ;;  %v3066_v26 = vld [vmem:[%s3018_s12 + $0x38] sm:$0xff] }
  0xed   : > { %2056 = vmatpush1.bf16.msra.mxu0 %v2055_v19  ;;  %v2143_v19 = vpack.c.bf16 %v460_v13, %v454_v12  ;;  %v472_v22 = vld [vmem:[#allocation5 + $0x110] sm:$0xff]  ;;  %v2149_v28 = vpack.c.bf16 %v485_v24, %v479_v23  ;;  %v478_v29 = vld [vmem:[#allocation5 + $0x140] sm:$0xff]  ;;  %v3077_v34 = vld [vmem:[%s3018_s12 + $0x48] sm:$0xff] }
  0xee   : > { %2120 = vmatpush1.bf16.msra.mxu1 %v2119_v20  ;;  %2058 = vmatprep.subr.bf16.mxu0 %v2057_v21  ;;  %v2145_v20 = vpack.c.bf16 %v473_v15, %v467_v14  ;;  %v466_v21 = vld [vmem:[#allocation5 + $0xe0] sm:$0xff]  ;;  %v484_v30 = vld [vmem:[#allocation5 + $0x170] sm:$0xff]  ;;  %v503_v39 = vld [vmem:[#allocation5 + $0x208] sm:$0xff] }
  0xef   : > { %2122 = vmatprep.subr.bf16.mxu1 %v2121_v25  ;;  %v3063_v25 = vld [vmem:[%s3018_s12 + $0x20] sm:$0xff]  ;;  %v2147_v27 = vpack.c.bf16 %v472_v22, %v466_v21  ;;  %v2151_v35 = vpack.c.bf16 %v484_v30, %v478_v29  ;;  %v496_v38 = vld [vmem:[#allocation5 + $0x1d0] sm:$0xff]  ;;  %v509_v40 = vld [vmem:[#allocation5 + $0x238] sm:$0xff] }
  0xf0   : > { %v3083_v41 = vld [vmem:[%s3018_s12 + $0x40] sm:$0xff]  ;;  %v3086_v42 = vld [vmem:[%s3018_s12 + $0x58] sm:$0xff]  ;;  %v508_v46 = vld [vmem:[#allocation5 + $0x230] sm:$0xff] }
  0xf1   : > { %2060 = vmatpush1.bf16.msra.mxu0 %v2059_v31  ;;  %v491_v31 = vld [vmem:[#allocation5 + $0x1a8] sm:$0xff]  ;;  %v521_v48 = vld [vmem:[#allocation5 + $0x298] sm:$0xff]  ;;  %v514_v53 = vld [vmem:[#allocation5 + $0x260] sm:$0xff] }
  0xf2   : > { %2124 = vmatpush1.bf16.msra.mxu1 %v2123_v32  ;;  %2062 = vmatprep.subr.bf16.mxu0 %v2061_v33  ;;  %v497_v32 = vld [vmem:[#allocation5 + $0x1d8] sm:$0xff]  ;;  %v3072_v33 = vld [vmem:[%s3018_s12 + $0x30] sm:$0xff]  ;;  %v515_v47 = vld [vmem:[#allocation5 + $0x268] sm:$0xff] }
  0xf3   : > { %2126 = vmatprep.subr.bf16.mxu1 %v2125_v37  ;;  %v2153_v36 = vpack.c.bf16 %v497_v32, %v491_v31  ;;  %v490_v37 = vld [vmem:[#allocation5 + $0x1a0] sm:$0xff]  ;;  %v3097_v50 = vld [vmem:[%s3018_s12 + $0x68] sm:$0xff]  ;;  %v2161_v52 = vpack.c.bf16 %v521_v48, %v515_v47  ;;  %v520_v54 = vld [vmem:[#allocation5 + $0x290] sm:$0xff] }
  0xf4   : > { %v3106_v58 = vld [vmem:[%s3018_s12 + $0x78] sm:$0xff]  ;;  %v2163_v59 = vpack.c.bf16 %v520_v54, %v514_v53  ;;  %v532_v62 = vld [vmem:[#allocation5 + $0x2f0] sm:$0xff]  ;;  %v539_v63 = vld [vmem:[#allocation5 + $0x328] sm:$0xff] }
  0xf5   : > { %2064 = vmatpush1.bf16.msra.mxu0 %v2063_v43  ;;  %v2155_v43 = vpack.c.bf16 %v496_v38, %v490_v37  ;;  %v545_v0 = vld [vmem:[#allocation5 + $0x358] sm:$0xff]  ;;  %v538_v5 = vld [vmem:[#allocation5 + $0x320] sm:$0xff]  ;;  %v544_v6 = vld [vmem:[#allocation5 + $0x350] sm:$0xff] }
  0xf6   : > { %2128 = vmatpush1.bf16.msra.mxu1 %v2127_v44  ;;  %2066 = vmatprep.subr.bf16.mxu0 %v2065_v45  ;;  %v2157_v44 = vpack.c.bf16 %v509_v40, %v503_v39  ;;  %v502_v45 = vld [vmem:[#allocation5 + $0x200] sm:$0xff]  ;;  %v2169_v4 = vpack.c.bf16 %v545_v0, %v539_v63  ;;  %v551_v7 = vld [vmem:[#allocation5 + $0x388] sm:$0xff]  ;;  %v3126_v12 = vld [vmem:[%s3018_s12 + $0x98] sm:$0xff]  ;;  %v2171_v13 = vpack.c.bf16 %v544_v6, %v538_v5 }
  0xf7   : > { %2130 = vmatprep.subr.bf16.mxu1 %v2129_v49  ;;  %v3092_v49 = vld [vmem:[%s3018_s12 + $0x50] sm:$0xff]  ;;  %v2159_v51 = vpack.c.bf16 %v508_v46, %v502_v45  ;;  %v550_v15 = vld [vmem:[#allocation5 + $0x380] sm:$0xff]  ;;  %v569_v21 = vld [vmem:[#allocation5 + $0x418] sm:$0xff] }
  0xf8   : > { %v3132_v22 = vld [vmem:[%s3018_s12 + $0x90] sm:$0xff]  ;;  %v3137_v23 = vld [vmem:[%s3018_s12 + $0xa8] sm:$0xff]  ;;  %v581_v31 = vld [vmem:[#allocation5 + $0x478] sm:$0xff] }
  0xf9   : > { %2068 = vmatpush1.bf16.msra.mxu0 %v2067_v55  ;;  %v527_v55 = vld [vmem:[#allocation5 + $0x2c8] sm:$0xff]  ;;  %v568_v29 = vld [vmem:[#allocation5 + $0x410] sm:$0xff]  ;;  %v3143_v32 = vld [vmem:[%s3018_s12 + $0xa0] sm:$0xff] }
  0xfa   : > { %2132 = vmatpush1.bf16.msra.mxu1 %v2131_v56  ;;  %2070 = vmatprep.subr.bf16.mxu0 %v2069_v57  ;;  %v533_v56 = vld [vmem:[#allocation5 + $0x2f8] sm:$0xff]  ;;  %v3103_v57 = vld [vmem:[%s3018_s12 + $0x60] sm:$0xff]  ;;  %v575_v30 = vld [vmem:[#allocation5 + $0x448] sm:$0xff] }
  0xfb   : > { %2134 = vmatprep.subr.bf16.mxu1 %v2133_v61  ;;  %v2165_v60 = vpack.c.bf16 %v533_v56, %v527_v55  ;;  %v526_v61 = vld [vmem:[#allocation5 + $0x2c0] sm:$0xff]  ;;  %v2181_v37 = vpack.c.bf16 %v581_v31, %v575_v30  ;;  %v580_v39 = vld [vmem:[#allocation5 + $0x470] sm:$0xff]  ;;  %v587_v40 = vld [vmem:[#allocation5 + $0x4a8] sm:$0xff] }
  0xfc   : > { %v574_v38 = vld [vmem:[#allocation5 + $0x440] sm:$0xff]  ;;  %v3157_v45 = vld [vmem:[%s3018_s12 + $0xc8] sm:$0xff]  ;;  %v605_v53 = vld [vmem:[#allocation5 + $0x538] sm:$0xff] }
  0xfd   : > { %2072 = vmatpush1.bf16.msra.mxu0 %v2071_v1  ;;  %v3112_v1 = vld [vmem:[%s3018_s12 + $0x70] sm:$0xff]  ;;  %v2183_v46 = vpack.c.bf16 %v580_v39, %v574_v38  ;;  %v586_v48 = vld [vmem:[#allocation5 + $0x4a0] sm:$0xff]  ;;  %v3166_v55 = vld [vmem:[%s3018_s12 + $0xd8] sm:$0xff] }
  0xfe   : > { %2136 = vmatpush1.bf16.msra.mxu1 %v2135_v2  ;;  %2138 = vmatprep.subr.bf16.mxu0 %v2137_v3  ;;  %v3117_v2 = vld [vmem:[%s3018_s12 + $0x88] sm:$0xff]  ;;  %v3163_v54 = vld [vmem:[%s3018_s12 + $0xc0] sm:$0xff]  ;;  %v617_v63 = vld [vmem:[#allocation5 + $0x598] sm:$0xff] }
  0xff   : > { %2201 = vmatprep.subr.bf16.mxu1 %v2137_v3  ;;  %v2167_v3 = vpack.c.bf16 %v532_v62, %v526_v61  ;;  %v604_v61 = vld [vmem:[#allocation5 + $0x530] sm:$0xff]  ;;  %v611_v62 = vld [vmem:[#allocation5 + $0x568] sm:$0xff]  ;;  %v610_v6 = vld [vmem:[#allocation5 + $0x560] sm:$0xff] }
 0x100   : > { %695 = vmatmul.mubr.f32.vlgmr.msra.gmra.mrb[0].mxu0 %v3044_v8  ;;  %v3172_v0 = vld [vmem:[%s3018_s12 + $0xd0] sm:$0xff]  ;;  %v2193_v5 = vpack.c.bf16 %v617_v63, %v611_v62 }
 0x101   : > { %856 = vmatmul.mubr.f32.vlgmr.msra.gmra.mrb[0].mxu1 %v3044_v8  ;;  %700 = vmatprep.mubr.f32.mxu0 %v3047_v10 }
 0x102   : > { %861 = vmatprep.mubr.f32.mxu1 %v3047_v10  ;;  %2140 = vmatpush1.bf16.msra.mxu0 %v2139_v9 }
 0x103   : > { %2217 = vmatpush1.bf16.msra.mxu1 %v2139_v9  ;;  %2142 = vmatprep.subr.bf16.mxu0 %v2141_v11  ;;  %v557_v9 = vld [vmem:[#allocation5 + $0x3b8] sm:$0xff] }
 0x104   : > { %701 = vmatmul.mubr.f32.gmra.mrb[2].mxu0 %v3054_v17  ;;  %2202 = vmatprep.subr.bf16.mxu1 %v2141_v11  ;;  %v3123_v11 = vld [vmem:[%s3018_s12 + $0x80] sm:$0xff]  ;;  %v2173_v14 = vpack.c.bf16 %v557_v9, %v551_v7  ;;  %v616_v7 = vld [vmem:[#allocation5 + $0x590] sm:$0xff] }
 0x105   : > { %862 = vmatmul.mubr.f32.gmra.mrb[2].mxu1 %v3054_v17  ;;  %706 = vmatprep.mubr.f32.mxu0 %v3057_v18  ;;  %v434_v9 = vld [vmem:[%s3018_s12 + $0xe0] sm:$0xff] }
 0x106   : > { %867 = vmatprep.mubr.f32.mxu1 %v3057_v18  ;;  %2144 = vmatpush1.bf16.msra.mxu0 %v2143_v19 }
 0x107   : > { %2218 = vmatpush1.bf16.msra.mxu1 %v2143_v19  ;;  %2146 = vmatprep.subr.bf16.mxu0 %v2145_v20  ;;  %v556_v19 = vld [vmem:[#allocation5 + $0x3b0] sm:$0xff] }
 0x108   : > { %707 = vmatmul.mubr.f32.gmra.mrb[4].mxu0 %v3063_v25  ;;  %2203 = vmatprep.subr.bf16.mxu1 %v2145_v20  ;;  %v563_v20 = vld [vmem:[#allocation5 + $0x3e8] sm:$0xff]  ;;  %v2175_v24 = vpack.c.bf16 %v556_v19, %v550_v15  ;;  %v436_v15 = vld [vmem:[%s3018_s12 + $0xf0] sm:$0xff] }
 0x109   : > { %712 = vmatprep.mubr.f32.mxu0 %v3066_v26  ;;  %868 = vmatmul.mubr.f32.gmra.mrb[4].mxu1 %v3063_v25  ;;  %v623_v19 = vld [vmem:[#allocation5 + $0x5c8] sm:$0xff] }
 0x10a   : > { %873 = vmatprep.mubr.f32.mxu1 %v3066_v26  ;;  %2148 = vmatpush1.bf16.msra.mxu0 %v2147_v27 }
 0x10b   : > { %2219 = vmatpush1.bf16.msra.mxu1 %v2147_v27  ;;  %2150 = vmatprep.subr.bf16.mxu0 %v2149_v28  ;;  %v2177_v27 = vpack.c.bf16 %v569_v21, %v563_v20  ;;  %v629_v20 = vld [vmem:[#allocation5 + $0x5f8] sm:$0xff] }
 0x10c   : > { %713 = vmatmul.mubr.f32.gmra.mrb[6].mxu0 %v3072_v33  ;;  %2204 = vmatprep.subr.bf16.mxu1 %v2149_v28  ;;  %v562_v28 = vld [vmem:[#allocation5 + $0x3e0] sm:$0xff]  ;;  %v2197_v21 = vpack.c.bf16 %v629_v20, %v623_v19 }
 0x10d   : > { %874 = vmatmul.mubr.f32.gmra.mrb[6].mxu1 %v3072_v33  ;;  %718 = vmatprep.mubr.f32.mxu0 %v3077_v34 }
 0x10e   : > { %879 = vmatprep.mubr.f32.mxu1 %v3077_v34  ;;  %2152 = vmatpush1.bf16.msra.mxu0 %v2151_v35 }
 0x10f   : > { %2220 = vmatpush1.bf16.msra.mxu1 %v2151_v35  ;;  %2154 = vmatprep.subr.bf16.mxu0 %v2153_v36  ;;  %v3146_v35 = vld [vmem:[%s3018_s12 + $0xb8] sm:$0xff] }
 0x110   : > { %719 = vmatmul.mubr.f32.gmra.mrb[8].mxu0 %v3083_v41  ;;  %2205 = vmatprep.subr.bf16.mxu1 %v2153_v36  ;;  %v2179_v36 = vpack.c.bf16 %v568_v29, %v562_v28 }
 0x111   : > { %724 = vmatprep.mubr.f32.mxu0 %v3086_v42  ;;  %880 = vmatmul.mubr.f32.gmra.mrb[8].mxu1 %v3083_v41 }
 0x112   : > { %885 = vmatprep.mubr.f32.mxu1 %v3086_v42  ;;  %2156 = vmatpush1.bf16.msra.mxu0 %v2155_v43 }
 0x113   : > { %2221 = vmatpush1.bf16.msra.mxu1 %v2155_v43  ;;  %2158 = vmatprep.subr.bf16.mxu0 %v2157_v44  ;;  %v593_v43 = vld [vmem:[#allocation5 + $0x4d8] sm:$0xff] }
 0x114   : > { %725 = vmatmul.mubr.f32.gmra.mrb[10].mxu0 %v3092_v49  ;;  %2206 = vmatprep.subr.bf16.mxu1 %v2157_v44  ;;  %v3152_v44 = vld [vmem:[%s3018_s12 + $0xb0] sm:$0xff]  ;;  %v2185_v47 = vpack.c.bf16 %v593_v43, %v587_v40 }
 0x115   : > { %886 = vmatmul.mubr.f32.gmra.mrb[10].mxu1 %v3092_v49  ;;  %730 = vmatprep.mubr.f32.mxu0 %v3097_v50 }
 0x116   : > { %891 = vmatprep.mubr.f32.mxu1 %v3097_v50  ;;  %2160 = vmatpush1.bf16.msra.mxu0 %v2159_v51 }
 0x117   : > { %2222 = vmatpush1.bf16.msra.mxu1 %v2159_v51  ;;  %2162 = vmatprep.subr.bf16.mxu0 %v2161_v52  ;;  %v592_v51 = vld [vmem:[#allocation5 + $0x4d0] sm:$0xff] }
 0x118   : > { %731 = vmatmul.mubr.f32.gmra.mrb[12].mxu0 %v3103_v57  ;;  %2207 = vmatprep.subr.bf16.mxu1 %v2161_v52  ;;  %v599_v52 = vld [vmem:[#allocation5 + $0x508] sm:$0xff]  ;;  %v2187_v56 = vpack.c.bf16 %v592_v51, %v586_v48 }
 0x119   : > { %736 = vmatprep.mubr.f32.mxu0 %v3106_v58  ;;  %892 = vmatmul.mubr.f32.gmra.mrb[12].mxu1 %v3103_v57 }
 0x11a   : > { %897 = vmatprep.mubr.f32.mxu1 %v3106_v58  ;;  %2164 = vmatpush1.bf16.msra.mxu0 %v2163_v59 }
 0x11b   : > { %2223 = vmatpush1.bf16.msra.mxu1 %v2163_v59  ;;  %2166 = vmatprep.subr.bf16.mxu0 %v2165_v60  ;;  %v2189_v59 = vpack.c.bf16 %v605_v53, %v599_v52 }
 0x11c   : > { %737 = vmatmul.mubr.f32.gmra.mrb[14].mxu0 %v3112_v1  ;;  %2208 = vmatprep.subr.bf16.mxu1 %v2165_v60  ;;  %v598_v60 = vld [vmem:[#allocation5 + $0x500] sm:$0xff] }
 0x11d   : > { %898 = vmatmul.mubr.f32.gmra.mrb[14].mxu1 %v3112_v1  ;;  %742 = vmatprep.mubr.f32.mxu0 %v3117_v2 }
 0x11e   : > { %903 = vmatprep.mubr.f32.mxu1 %v3117_v2  ;;  %2168 = vmatpush1.bf16.msra.mxu0 %v2167_v3 }
 0x11f   : > { %2224 = vmatpush1.bf16.msra.mxu1 %v2167_v3  ;;  %2170 = vmatprep.subr.bf16.mxu0 %v2169_v4  ;;  %v3177_v3 = vld [vmem:[%s3018_s12 + $0xe8] sm:$0xff] }
 0x120   : > { %743 = vmatmul.mubr.f32.gmra.mrb[16].mxu0 %v3123_v11  ;;  %2209 = vmatprep.subr.bf16.mxu1 %v2169_v4  ;;  %v2191_v4 = vpack.c.bf16 %v604_v61, %v598_v60 }
 0x121   : > { %748 = vmatprep.mubr.f32.mxu0 %v3126_v12  ;;  %904 = vmatmul.mubr.f32.gmra.mrb[16].mxu1 %v3123_v11 }
 0x122   : > { %909 = vmatprep.mubr.f32.mxu1 %v3126_v12  ;;  %2172 = vmatpush1.bf16.msra.mxu0 %v2171_v13 }
 0x123   : > { %2225 = vmatpush1.bf16.msra.mxu1 %v2171_v13  ;;  %2174 = vmatprep.subr.bf16.mxu0 %v2173_v14  ;;  %v437_v13 = vld [vmem:[%s3018_s12 + $0xf8] sm:$0xff] }
 0x124   : > { %749 = vmatmul.mubr.f32.gmra.mrb[18].mxu0 %v3132_v22  ;;  %2210 = vmatprep.subr.bf16.mxu1 %v2173_v14  ;;  %v2195_v14 = vpack.c.bf16 %v616_v7, %v610_v6 }
 0x125   : > { %910 = vmatmul.mubr.f32.gmra.mrb[18].mxu1 %v3132_v22  ;;  %754 = vmatprep.mubr.f32.mxu0 %v3137_v23 }
 0x126   : > { %915 = vmatprep.mubr.f32.mxu1 %v3137_v23  ;;  %2176 = vmatpush1.bf16.msra.mxu0 %v2175_v24 }
 0x127   : > { %2226 = vmatpush1.bf16.msra.mxu1 %v2175_v24  ;;  %2178 = vmatprep.subr.bf16.mxu0 %v2177_v27  ;;  %v622_v24 = vld [vmem:[#allocation5 + $0x5c0] sm:$0xff] }
 0x128   : > { %755 = vmatmul.mubr.f32.gmra.mrb[20].mxu0 %v3143_v32  ;;  %2211 = vmatprep.subr.bf16.mxu1 %v2177_v27  ;;  %v628_v27 = vld [vmem:[#allocation5 + $0x5f0] sm:$0xff] }
 0x129   : > { %760 = vmatprep.mubr.f32.mxu0 %v3146_v35  ;;  %916 = vmatmul.mubr.f32.gmra.mrb[20].mxu1 %v3143_v32  ;;  %v2199_v28 = vpack.c.bf16 %v628_v27, %v622_v24 }
 0x12a   : > { %921 = vmatprep.mubr.f32.mxu1 %v3146_v35  ;;  %2180 = vmatpush1.bf16.msra.mxu0 %v2179_v36 }
 0x12b   : > { %2227 = vmatpush1.bf16.msra.mxu1 %v2179_v36  ;;  %2182 = vmatprep.subr.bf16.mxu0 %v2181_v37 }
 0x12c   : > { %761 = vmatmul.mubr.f32.gmra.mrb[22].mxu0 %v3152_v44  ;;  %2212 = vmatprep.subr.bf16.mxu1 %v2181_v37 }
 0x12d   : > { %922 = vmatmul.mubr.f32.gmra.mrb[22].mxu1 %v3152_v44  ;;  %766 = vmatprep.mubr.f32.mxu0 %v3157_v45 }
 0x12e   : > { %927 = vmatprep.mubr.f32.mxu1 %v3157_v45  ;;  %2184 = vmatpush1.bf16.msra.mxu0 %v2183_v46 }
 0x12f   : > { %2228 = vmatpush1.bf16.msra.mxu1 %v2183_v46  ;;  %2186 = vmatprep.subr.bf16.mxu0 %v2185_v47 }
 0x130   : > { %767 = vmatmul.mubr.f32.gmra.mrb[24].mxu0 %v3163_v54  ;;  %2213 = vmatprep.subr.bf16.mxu1 %v2185_v47 }
 0x131   : > { %772 = vmatprep.mubr.f32.mxu0 %v3166_v55  ;;  %928 = vmatmul.mubr.f32.gmra.mrb[24].mxu1 %v3163_v54 }
 0x132   : > { %933 = vmatprep.mubr.f32.mxu1 %v3166_v55  ;;  %2188 = vmatpush1.bf16.msra.mxu0 %v2187_v56 }
 0x133   : > { %2229 = vmatpush1.bf16.msra.mxu1 %v2187_v56  ;;  %2190 = vmatprep.subr.bf16.mxu0 %v2189_v59 }
 0x134   : > { %773 = vmatmul.mubr.f32.gmra.mrb[26].mxu0 %v3172_v0  ;;  %2214 = vmatprep.subr.bf16.mxu1 %v2189_v59 }
 0x135   : > { %934 = vmatmul.mubr.f32.gmra.mrb[26].mxu1 %v3172_v0  ;;  %778 = vmatprep.mubr.f32.mxu0 %v3177_v3 }
 0x136   : > { %939 = vmatprep.mubr.f32.mxu1 %v3177_v3  ;;  %2192 = vmatpush1.bf16.msra.mxu0 %v2191_v4 }
 0x137   : > { %2230 = vmatpush1.bf16.msra.mxu1 %v2191_v4  ;;  %2194 = vmatprep.subr.bf16.mxu0 %v2193_v5 }
 0x138   : > { %779 = vmatmul.mubr.f32.gmra.mrb[28].mxu0 %v434_v9  ;;  %2215 = vmatprep.subr.bf16.mxu1 %v2193_v5 }
 0x139   : > { %784 = vmatprep.mubr.f32.mxu0 %v437_v13  ;;  %940 = vmatmul.mubr.f32.gmra.mrb[28].mxu1 %v434_v9 }
 0x13a   : > { %945 = vmatprep.mubr.f32.mxu1 %v437_v13  ;;  %2196 = vmatpush1.bf16.msra.mxu0 %v2195_v14 }
 0x13b   : > { %2231 = vmatpush1.bf16.msra.mxu1 %v2195_v14  ;;  %2198 = vmatprep.subr.bf16.mxu0 %v2197_v21 }
 0x13c   : > { %785 = vmatmul.mubr.f32.gmra.mrb[30].mxu0 %v436_v15  ;;  %2216 = vmatprep.subr.bf16.mxu1 %v2197_v21 }
 0x13d   : > { %946 = vmatmul.mubr.f32.gmra.mrb[30].mxu1 %v436_v15  ;;  %1016 = vmatprep.mubr.f32.mxu0 %v3039_v16 }
 0x13e   : > { %1064 = vmatprep.mubr.f32.mxu1 %v3117_v2  ;;  %2200 = vmatpush1.bf16.msra.mxu0 %v2199_v28 }
 0x13f   : > { %2232 = vmatpush1.bf16.msra.mxu1 %v2199_v28 }
 0x141   : > { %1017 = vmatmul.mubr.f32.vlgmr.msra.gmra.mrb[32].mxu0 %v3044_v8 }
 0x142   : > { %1065 = vmatmul.mubr.f32.vlgmr.msra.gmra.mrb[32].mxu1 %v3123_v11  ;;  %1022 = vmatprep.mubr.f32.mxu0 %v3047_v10 }
 0x143   : > { %1070 = vmatprep.mubr.f32.mxu1 %v3126_v12 }
 0x145   : > { %1023 = vmatmul.mubr.f32.gmra.mrb[34].mxu0 %v3054_v17 }
 0x146   : > { %1071 = vmatmul.mubr.f32.gmra.mrb[34].mxu1 %v3132_v22  ;;  %1028 = vmatprep.mubr.f32.mxu0 %v3057_v18 }
 0x147   : > { %1076 = vmatprep.mubr.f32.mxu1 %v3137_v23 }
 0x149   : > { %1029 = vmatmul.mubr.f32.gmra.mrb[36].mxu0 %v3063_v25 }
 0x14a   : > { %1077 = vmatmul.mubr.f32.gmra.mrb[36].mxu1 %v3143_v32  ;;  %1034 = vmatprep.mubr.f32.mxu0 %v3066_v26 }
 0x14b   : > { %1082 = vmatprep.mubr.f32.mxu1 %v3146_v35 }
 0x14d   : > { %1035 = vmatmul.mubr.f32.gmra.mrb[38].mxu0 %v3072_v33 }
 0x14e   : > { %1083 = vmatmul.mubr.f32.gmra.mrb[38].mxu1 %v3152_v44  ;;  %1040 = vmatprep.mubr.f32.mxu0 %v3077_v34 }
 0x14f   : > { %1088 = vmatprep.mubr.f32.mxu1 %v3157_v45 }
 0x151   : > { %1041 = vmatmul.mubr.f32.gmra.mrb[40].mxu0 %v3083_v41 }
 0x152   : > { %1089 = vmatmul.mubr.f32.gmra.mrb[40].mxu1 %v3163_v54  ;;  %1046 = vmatprep.mubr.f32.mxu0 %v3086_v42 }
 0x153   : > { %1094 = vmatprep.mubr.f32.mxu1 %v3166_v55 }
 0x155   : > { %1047 = vmatmul.mubr.f32.gmra.mrb[42].mxu0 %v3092_v49 }
 0x156   : > { %1095 = vmatmul.mubr.f32.gmra.mrb[42].mxu1 %v3172_v0  ;;  %1052 = vmatprep.mubr.f32.mxu0 %v3097_v50 }
 0x157   : > { %1100 = vmatprep.mubr.f32.mxu1 %v3177_v3 }
 0x159   : > { %1053 = vmatmul.mubr.f32.gmra.mrb[44].mxu0 %v3103_v57 }
 0x15a   : > { %1101 = vmatmul.mubr.f32.gmra.mrb[44].mxu1 %v434_v9  ;;  %1058 = vmatprep.mubr.f32.mxu0 %v3106_v58 }
 0x15b   : > { %1106 = vmatprep.mubr.f32.mxu1 %v437_v13 }
 0x15d   : > { %1059 = vmatmul.mubr.f32.gmra.mrb[46].mxu0 %v3112_v1 }
 0x15e   : > { %1107 = vmatmul.mubr.f32.gmra.mrb[46].mxu1 %v436_v15 }
 0x1d3   : > { %v3215_v16 = vpop.f32.mrb[0].mxu0 }
 0x1d4   : > { %v3217_v8 = vpop.f32.mrb[0].mxu1  ;;  %1161 = vrot.lane.b32.xlu0 %v3215_v16, %s2648_s19  ;;  %v3221_v10 = vpop.f32.mrb[1].mxu0 }
 0x1d5   : > { %v3223_v17 = vpop.f32.mrb[1].mxu1 }
 0x1d7   : > { %v3225_v18 = vpop.f32.mrb[2].mxu0 }
 0x1d8   : > { %v3227_v25 = vpop.f32.mrb[2].mxu1  ;;  %1257 = vrot.lane.b32.xlu0 %v3217_v8, %s2648_s19  ;;  %v3231_v26 = vpop.f32.mrb[3].mxu0 }
 0x1d9   : > { %1259 = vrot.lane.b32.xlu1 %v3227_v25, %s2648_s19  ;;  %v3235_v33 = vpop.f32.mrb[3].mxu1 }
 0x1db   : > { %v3237_v34 = vpop.f32.mrb[4].mxu0 }
 0x1dc   : > { %1369 = vrot.lane.b32.xlu0 %v3221_v10, %s2648_s19  ;;  %v3241_v41 = vpop.f32.mrb[5].mxu0  ;;  %v3243_v42 = vpop.f32.mrb[4].mxu1 }
 0x1dd   : > { %1371 = vrot.lane.b32.xlu1 %v3231_v26, %s2648_s19  ;;  %v3247_v49 = vpop.f32.mrb[5].mxu1 }
 0x1df   : > { %v3249_v50 = vpop.f32.mrb[6].mxu0 }
 0x1e0   : > { %1466 = vrot.lane.b32.xlu0 %v3223_v17, %s2648_s19  ;;  %v3253_v57 = vpop.f32.mrb[7].mxu0  ;;  %v3255_v58 = vpop.f32.mrb[6].mxu1 }
 0x1e1   : > { %1468 = vrot.lane.b32.xlu1 %v3235_v33, %s2648_s19  ;;  %v3259_v1 = vpop.f32.mrb[7].mxu1 }
 0x1e3   : > { %v3261_v2 = vpop.f32.mrb[8].mxu0 }
 0x1e4   : > { %1163 = vrot.lane.b32.xlu0 %v3225_v18, %s2648_s19  ;;  %v3265_v11 = vpop.f32.mrb[9].mxu0  ;;  %v3267_v12 = vpop.f32.mrb[8].mxu1 }
 0x1e5   : > { %1165 = vrot.lane.b32.xlu1 %v3237_v34, %s2648_s19  ;;  %v3271_v22 = vpop.f32.mrb[9].mxu1 }
 0x1e7   : > { %v3273_v23 = vpop.f32.mrb[10].mxu0 }
 0x1e8   : > { %1261 = vrot.lane.b32.xlu0 %v3243_v42, %s2648_s19  ;;  %v3277_v29 = vpop.f32.mrb[11].mxu0  ;;  %v3279_v30 = vpop.f32.mrb[10].mxu1 }
 0x1e9   : > { %1167 = vrot.lane.b32.xlu1 %v3249_v50, %s2648_s19  ;;  %v3283_v31 = vpop.f32.mrb[11].mxu1 }
 0x1eb   : > { %v3285_v32 = vpop.f32.mrb[12].mxu0 }
 0x1ec   : > { %1373 = vrot.lane.b32.xlu0 %v3241_v41, %s2648_s19  ;;  %v3289_v35 = vpop.f32.mrb[13].mxu0  ;;  %v3291_v36 = vpop.f32.mrb[12].mxu1 }
 0x1ed   : > { %1263 = vrot.lane.b32.xlu1 %v3255_v58, %s2648_s19  ;;  %v3295_v37 = vpop.f32.mrb[13].mxu1 }
 0x1ef   : > { %v3297_v38 = vpop.f32.mrb[14].mxu0 }
 0x1f0   : > { %1470 = vrot.lane.b32.xlu0 %v3247_v49, %s2648_s19  ;;  %v3301_v39 = vpop.f32.mrb[15].mxu0  ;;  %v3303_v40 = vpop.f32.mrb[14].mxu1 }
 0x1f1   : > { %1375 = vrot.lane.b32.xlu1 %v3253_v57, %s2648_s19  ;;  %v3307_v43 = vpop.f32.mrb[15].mxu1 }
 0x1f3   : > { %v3309_v44 = vpop.f32.mrb[16].mxu0 }
 0x1f4   : > { %1169 = vrot.lane.b32.xlu0 %v3261_v2, %s2648_s19  ;;  %v3313_v45 = vpop.f32.mrb[17].mxu0  ;;  %v3315_v46 = vpop.f32.mrb[16].mxu1 }
 0x1f5   : > { %3861 = vst [vmem:[#allocation31_spill] sm:$0xff] %v3313_v45  ;;  %1472 = vrot.lane.b32.xlu1 %v3259_v1, %s2648_s19  ;;  %v3319_v47 = vpop.f32.mrb[17].mxu1 }
 0x1f6   : > { %3862 = vst [vmem:[#allocation32_spill] sm:$0xff] %v3319_v47 }
 0x1f7   : > { %v3321_v48 = vpop.f32.mrb[18].mxu0 }
 0x1f8   : > { %1265 = vrot.lane.b32.xlu0 %v3267_v12, %s2648_s19  ;;  %v3325_v51 = vpop.f32.mrb[19].mxu0  ;;  %v3327_v52 = vpop.f32.mrb[18].mxu1 }
 0x1f9   : > { %3863 = vst [vmem:[#allocation33_spill] sm:$0xff] %v3325_v51  ;;  %3864 = vst [vmem:[#allocation34_spill] sm:$0xff] %v3327_v52  ;;  %1171 = vrot.lane.b32.xlu1 %v3273_v23, %s2648_s19  ;;  %v3331_v53 = vpop.f32.mrb[19].mxu1 }
 0x1fb   : > { %v3333_v54 = vpop.f32.mrb[20].mxu0 }
 0x1fc   : > { %1377 = vrot.lane.b32.xlu0 %v3265_v11, %s2648_s19  ;;  %v3337_v55 = vpop.f32.mrb[21].mxu0  ;;  %v3339_v56 = vpop.f32.mrb[20].mxu1 }
 0x1fd   : > { %3865 = vst [vmem:[#allocation35_spill] sm:$0xff] %v3337_v55  ;;  %3866 = vst [vmem:[#allocation36_spill] sm:$0xff] %v3339_v56  ;;  %1267 = vrot.lane.b32.xlu1 %v3279_v30, %s2648_s19  ;;  %v3343_v59 = vpop.f32.mrb[21].mxu1 }
 0x1ff   : > { %v3345_v60 = vpop.f32.mrb[22].mxu0 }
 0x200   : > { %3867 = vst [vmem:[#allocation37_spill] sm:$0xff] %v3345_v60  ;;  %1474 = vrot.lane.b32.xlu0 %v3271_v22, %s2648_s19  ;;  %v3349_v61 = vpop.f32.mrb[23].mxu0  ;;  %v3351_v62 = vpop.f32.mrb[22].mxu1 }
 0x201   : > { %3868 = vst [vmem:[#allocation38_spill] sm:$0xff] %v3351_v62  ;;  %1379 = vrot.lane.b32.xlu1 %v3277_v29, %s2648_s19  ;;  %v3355_v63 = vpop.f32.mrb[23].mxu1 }
 0x203   : > { %v3357_v0 = vpop.f32.mrb[24].mxu0 }
 0x204   : > { %1173 = vrot.lane.b32.xlu0 %v3285_v32, %s2648_s19  ;;  %v3361_v3 = vpop.f32.mrb[25].mxu0  ;;  %v3363_v4 = vpop.f32.mrb[24].mxu1 }
 0x205   : > { %1476 = vrot.lane.b32.xlu1 %v3283_v31, %s2648_s19  ;;  %v3367_v5 = vpop.f32.mrb[25].mxu1 }
 0x206   : > { %3869 = vst [vmem:[#allocation39_spill] sm:$0xff] %v3367_v5 }
 0x207   : > { %v3369_v6 = vpop.f32.mrb[26].mxu0 }
 0x208   : > { %1269 = vrot.lane.b32.xlu0 %v3291_v36, %s2648_s19  ;;  %v3373_v7 = vpop.f32.mrb[27].mxu0  ;;  %v3375_v9 = vpop.f32.mrb[26].mxu1 }
 0x209   : > { %3870 = vst [vmem:[#allocation40_spill] sm:$0xff] %v3373_v7  ;;  %3871 = vst [vmem:[#allocation41_spill] sm:$0xff] %v3375_v9  ;;  %1175 = vrot.lane.b32.xlu1 %v3297_v38, %s2648_s19  ;;  %v3379_v13 = vpop.f32.mrb[27].mxu1 }
 0x20a   : > { %3872 = vst [vmem:[#allocation42_spill] sm:$0xff] %v3379_v13 }
 0x20b   : > { %v3381_v14 = vpop.f32.mrb[28].mxu0 }
 0x20c   : > { %3873 = vst [vmem:[#allocation43_spill] sm:$0xff] %v3381_v14  ;;  %1381 = vrot.lane.b32.xlu0 %v3289_v35, %s2648_s19  ;;  %v3385_v15 = vpop.f32.mrb[29].mxu0  ;;  %v3387_v19 = vpop.f32.mrb[28].mxu1 }
 0x20d   : > { %1271 = vrot.lane.b32.xlu1 %v3303_v40, %s2648_s19  ;;  %v3391_v20 = vpop.f32.mrb[29].mxu1 }
 0x20f   : > { %v3393_v21 = vpop.f32.mrb[30].mxu0 }
 0x210   : > { %3874 = vst [vmem:[#allocation44_spill] sm:$0xff] %v3393_v21  ;;  %1478 = vrot.lane.b32.xlu0 %v3295_v37, %s2648_s19  ;;  %v3397_v24 = vpop.f32.mrb[31].mxu0  ;;  %v3399_v27 = vpop.f32.mrb[30].mxu1 }
 0x211   : > { %1383 = vrot.lane.b32.xlu1 %v3301_v39, %s2648_s19  ;;  %v3403_v28 = vpop.f32.mrb[31].mxu1 }
 0x214   : > { %1177 = vrot.lane.b32.xlu0 %v3309_v44, %s2648_s19 }
 0x215   : > { %1480 = vrot.lane.b32.xlu1 %v3307_v43, %s2648_s19 }
 0x218   : > { %1273 = vrot.lane.b32.xlu0 %v3315_v46, %s2648_s19 }
 0x219   : > { %1179 = vrot.lane.b32.xlu1 %v3321_v48, %s2648_s19 }
 0x21c   : > { %1385 = vrot.lane.b32.xlu0 %v3313_v45, %s2648_s19 }
 0x21d   : > { %1275 = vrot.lane.b32.xlu1 %v3327_v52, %s2648_s19 }
 0x220   : > { %1482 = vrot.lane.b32.xlu0 %v3319_v47, %s2648_s19  ;;  %v1018_v47 = vpop.f32.mrb[32].mxu0 }
 0x221   : > { %1387 = vrot.lane.b32.xlu1 %v3325_v51, %s2648_s19  ;;  %v1066_v51 = vpop.f32.mrb[32].mxu1  ;;  %v1020_v52 = vpop.f32.mrb[33].mxu0  ;;  %1337 = vst [vmem:[%s3434_s15] sm:$0xff] %v1018_v47 }
 0x222   : > { %v1068_v45 = vpop.f32.mrb[33].mxu1  ;;  %1345 = vst [vmem:[%s3434_s15 + $0x40] sm:$0xff] %v1066_v51  ;;  %1976 = vst [vmem:[%s3434_s15 + $0x80] sm:$0xff] %v1020_v52 }
 0x223   : > { %1984 = vst [vmem:[%s3434_s15 + $0xc0] sm:$0xff] %v1068_v45 }
 0x224   : > { %1181 = vrot.lane.b32.xlu0 %v3333_v54, %s2648_s19 }
 0x225   : > { %1484 = vrot.lane.b32.xlu1 %v3331_v53, %s2648_s19 }
 0x228   : > { %1277 = vrot.lane.b32.xlu0 %v3339_v56, %s2648_s19 }
 0x229   : > { %1183 = vrot.lane.b32.xlu1 %v3345_v60, %s2648_s19 }
 0x22c   : > { %1389 = vrot.lane.b32.xlu0 %v3337_v55, %s2648_s19  ;;  %v1072_v55 = vpop.f32.mrb[34].mxu1 }
 0x22d   : > { %1279 = vrot.lane.b32.xlu1 %v3351_v62, %s2648_s19  ;;  %v1024_v62 = vpop.f32.mrb[34].mxu0  ;;  %1346 = vst [vmem:[%s3434_s15 + $0x48] sm:$0xff] %v1072_v55  ;;  %v1074_v56 = vpop.f32.mrb[35].mxu1 }
 0x22e   : > { %1338 = vst [vmem:[%s3434_s15 + $0x8] sm:$0xff] %v1024_v62  ;;  %v1026_v60 = vpop.f32.mrb[35].mxu0  ;;  %1985 = vst [vmem:[%s3434_s15 + $0xc8] sm:$0xff] %v1074_v56  ;;  %v1078_v47 = vpop.f32.mrb[36].mxu1 }
 0x22f   : > { %1977 = vst [vmem:[%s3434_s15 + $0x88] sm:$0xff] %v1026_v60  ;;  %v1030_v45 = vpop.f32.mrb[36].mxu0  ;;  %1347 = vst [vmem:[%s3434_s15 + $0x50] sm:$0xff] %v1078_v47  ;;  %v1080_v52 = vpop.f32.mrb[37].mxu1 }
 0x230   : > { %1486 = vrot.lane.b32.xlu0 %v3343_v59, %s2648_s19  ;;  %1339 = vst [vmem:[%s3434_s15 + $0x10] sm:$0xff] %v1030_v45  ;;  %v1032_v51 = vpop.f32.mrb[37].mxu0  ;;  %1986 = vst [vmem:[%s3434_s15 + $0xd0] sm:$0xff] %v1080_v52  ;;  %v1084_v56 = vpop.f32.mrb[38].mxu1 }
 0x231   : > { %1391 = vrot.lane.b32.xlu1 %v3349_v61, %s2648_s19  ;;  %1978 = vst [vmem:[%s3434_s15 + $0x90] sm:$0xff] %v1032_v51  ;;  %v1036_v55 = vpop.f32.mrb[38].mxu0  ;;  %1348 = vst [vmem:[%s3434_s15 + $0x58] sm:$0xff] %v1084_v56  ;;  %v1086_v62 = vpop.f32.mrb[39].mxu1 }
 0x232   : > { %1340 = vst [vmem:[%s3434_s15 + $0x18] sm:$0xff] %v1036_v55  ;;  %v1038_v60 = vpop.f32.mrb[39].mxu0  ;;  %1987 = vst [vmem:[%s3434_s15 + $0xd8] sm:$0xff] %v1086_v62  ;;  %v1090_v47 = vpop.f32.mrb[40].mxu1 }
 0x233   : > { %1979 = vst [vmem:[%s3434_s15 + $0x98] sm:$0xff] %v1038_v60  ;;  %v1042_v45 = vpop.f32.mrb[40].mxu0  ;;  %1349 = vst [vmem:[%s3434_s15 + $0x60] sm:$0xff] %v1090_v47  ;;  %v1092_v52 = vpop.f32.mrb[41].mxu1 }
 0x234   : > { %1185 = vrot.lane.b32.xlu0 %v3357_v0, %s2648_s19  ;;  %1341 = vst [vmem:[%s3434_s15 + $0x20] sm:$0xff] %v1042_v45  ;;  %v1044_v51 = vpop.f32.mrb[41].mxu0  ;;  %1988 = vst [vmem:[%s3434_s15 + $0xe0] sm:$0xff] %v1092_v52  ;;  %v1096_v56 = vpop.f32.mrb[42].mxu1  ;;  %v1129_v45 = vld [vmem:[%s3483_s4] sm:$0xff] }
 0x235   : > { %1488 = vrot.lane.b32.xlu1 %v3355_v63, %s2648_s19  ;;  %1980 = vst [vmem:[%s3434_s15 + $0xa0] sm:$0xff] %v1044_v51  ;;  %v1048_v55 = vpop.f32.mrb[42].mxu0  ;;  %1350 = vst [vmem:[%s3434_s15 + $0x68] sm:$0xff] %v1096_v56  ;;  %v1098_v62 = vpop.f32.mrb[43].mxu1  ;;  %v1113_v52 = vld [vmem:[%s3032_s18] sm:$0xff] }
 0x236   : > { %1342 = vst [vmem:[%s3434_s15 + $0x28] sm:$0xff] %v1048_v55  ;;  %v1050_v60 = vpop.f32.mrb[43].mxu0  ;;  %1989 = vst [vmem:[%s3434_s15 + $0xe8] sm:$0xff] %v1098_v62  ;;  %v1102_v51 = vpop.f32.mrb[44].mxu1 }
 0x237   : > { %1981 = vst [vmem:[%s3434_s15 + $0xa8] sm:$0xff] %v1050_v60  ;;  %v1054_v47 = vpop.f32.mrb[44].mxu0  ;;  %1351 = vst [vmem:[%s3434_s15 + $0x70] sm:$0xff] %v1102_v51  ;;  %v1145_v60 = vmul.f32 %v1113_v52, %v3215_v16 }
 0x238   : > { %1281 = vrot.lane.b32.xlu0 %v3363_v4, %s2648_s19  ;;  %1343 = vst [vmem:[%s3434_s15 + $0x30] sm:$0xff] %v1054_v47  ;;  %v1056_v56 = vpop.f32.mrb[45].mxu0  ;;  %v1130_v47 = vld [vmem:[%s3483_s4 + $0x8] sm:$0xff] }
 0x239   : > { %1187 = vrot.lane.b32.xlu1 %v3369_v6, %s2648_s19  ;;  %1982 = vst [vmem:[%s3434_s15 + $0xb0] sm:$0xff] %v1056_v56  ;;  %v1060_v51 = vpop.f32.mrb[46].mxu0 }
 0x23a   : > { %1344 = vst [vmem:[%s3434_s15 + $0x38] sm:$0xff] %v1060_v51  ;;  %v1062_v16 = vpop.f32.mrb[47].mxu0 }
 0x23b   : > { %1983 = vst [vmem:[%s3434_s15 + $0xb8] sm:$0xff] %v1062_v16 }
 0x23c   : > { %1393 = vrot.lane.b32.xlu0 %v3361_v3, %s2648_s19 }
 0x23d   : > { %1283 = vrot.lane.b32.xlu1 %v3375_v9, %s2648_s19 }
 0x240   : > { %1490 = vrot.lane.b32.xlu0 %v3367_v5, %s2648_s19 }
 0x241   : > { %1395 = vrot.lane.b32.xlu1 %v3373_v7, %s2648_s19 }
 0x244   : > { %1189 = vrot.lane.b32.xlu0 %v3381_v14, %s2648_s19  ;;  %v1104_v14 = vpop.f32.mrb[45].mxu1 }
 0x245   : > { %1492 = vrot.lane.b32.xlu1 %v3379_v13, %s2648_s19  ;;  %1990 = vst [vmem:[%s3434_s15 + $0xf0] sm:$0xff] %v1104_v14  ;;  %v1114_v13 = vld [vmem:[%s3032_s18 + $0x8] sm:$0xff]  ;;  %v1108_v5 = vpop.f32.mrb[46].mxu1 }
 0x246   : > { %v1162_v55 = vpop.permute.xlu0 %1161  ;;  %1352 = vst [vmem:[%s3434_s15 + $0x78] sm:$0xff] %v1108_v5  ;;  %v1354_v16 = vmul.f32 %v1114_v13, %v3231_v26  ;;  %v1451_v26 = vmul.f32 %v1114_v13, %v3235_v33 }
 0x247   : > { %v1193_v62 = vmul.f32 %v1162_v55, %v1129_v45  ;;  %v1241_v55 = vmul.f32 %v1113_v52, %v3217_v8 }
 0x248   : > { %1285 = vrot.lane.b32.xlu0 %v3387_v19, %s2648_s19 }
 0x249   : > { %v1209_v7 = vadd.f32 %v1193_v62, %v1145_v60  ;;  %1191 = vrot.lane.b32.xlu1 %v3393_v21, %s2648_s19  ;;  %v1110_v60 = vpop.f32.mrb[47].mxu1  ;;  %v1242_v62 = vmul.f32 %v1114_v13, %v3227_v25 }
 0x24a   : > { %v1258_v9 = vpop.permute.xlu0 %1257  ;;  %1991 = vst [vmem:[%s3434_s15 + $0xf8] sm:$0xff] %v1110_v60 }
 0x24b   : > { %1225 = vst [vmem:[%s3504_s5] sm:$0xff] %v1209_v7  ;;  %v1260_v14 = vpop.permute.xlu1 %1259  ;;  %v1289_v56 = vmul.f32 %v1258_v9, %v1129_v45  ;;  %v1353_v7 = vmul.f32 %v1113_v52, %v3221_v10 }
 0x24c   : > { %v1290_v21 = vmul.f32 %v1260_v14, %v1130_v47  ;;  %1397 = vrot.lane.b32.xlu0 %v3385_v15, %s2648_s19 }
 0x24d   : > { %v1305_v5 = vadd.f32 %v1289_v56, %v1241_v55  ;;  %1287 = vrot.lane.b32.xlu1 %v3399_v27, %s2648_s19  ;;  %v1450_v56 = vmul.f32 %v1113_v52, %v3223_v17  ;;  %v1146_v17 = vmul.f32 %v1114_v13, %v3225_v18 }
 0x24e   : > { %v1306_v8 = vadd.f32 %v1290_v21, %v1242_v62  ;;  %v1370_v51 = vpop.permute.xlu0 %1369 }
 0x24f   : > { %1321 = vst [vmem:[%s3516_s8] sm:$0xff] %v1305_v5  ;;  %v1401_v25 = vmul.f32 %v1370_v51, %v1129_v45  ;;  %v1372_v9 = vpop.permute.xlu1 %1371 }
 0x250   : > { %1322 = vst [vmem:[%s3516_s8 + $0x8] sm:$0xff] %v1306_v8  ;;  %v1402_v55 = vmul.f32 %v1372_v9, %v1130_v47  ;;  %1494 = vrot.lane.b32.xlu0 %v3391_v20, %s2648_s19  ;;  %v1115_v8 = vld [vmem:[%s3032_s18 + $0x10] sm:$0xff] }
 0x251   : > { %v1417_v21 = vadd.f32 %v1401_v25, %v1353_v7  ;;  %1399 = vrot.lane.b32.xlu1 %v3397_v24, %s2648_s19  ;;  %v1131_v7 = vld [vmem:[%s3483_s4 + $0x10] sm:$0xff]  ;;  %v1147_v33 = vmul.f32 %v1115_v8, %v3237_v34 }
 0x252   : > { %v1418_v10 = vadd.f32 %v1402_v55, %v1354_v16  ;;  %v1467_v14 = vpop.permute.xlu0 %1466  ;;  %v1116_v55 = vld [vmem:[%s3032_s18 + $0x18] sm:$0xff] }
 0x253   : > { %1944 = vst [vmem:[%s3504_s5 + $0x80] sm:$0xff] %v1417_v21  ;;  %v1498_v60 = vmul.f32 %v1467_v14, %v1129_v45  ;;  %v1469_v62 = vpop.permute.xlu1 %1468  ;;  %v1148_v13 = vmul.f32 %v1116_v55, %v3249_v50 }
 0x254   : > { %1945 = vst [vmem:[%s3504_s5 + $0x88] sm:$0xff] %v1418_v10  ;;  %v1499_v5 = vmul.f32 %v1469_v62, %v1130_v47  ;;  %v1132_v10 = vld [vmem:[%s3483_s4 + $0x18] sm:$0xff] }
 0x255   : > { %v1514_v51 = vadd.f32 %v1498_v60, %v1450_v56  ;;  %1496 = vrot.lane.b32.xlu1 %v3403_v28, %s2648_s19  ;;  %v1243_v60 = vmul.f32 %v1115_v8, %v3243_v42  ;;  %v1244_v42 = vmul.f32 %v1116_v55, %v3255_v58  ;;  %v1133_v58 = vld [vmem:[%s3483_s4 + $0x20] sm:$0xff] }
 0x256   : > { %v1515_v25 = vadd.f32 %v1499_v5, %v1451_v26  ;;  %v1164_v9 = vpop.permute.xlu0 %1163 }
 0x257   : > { %1960 = vst [vmem:[%s3516_s8 + $0x80] sm:$0xff] %v1514_v51  ;;  %v1194_v45 = vmul.f32 %v1164_v9, %v1130_v47  ;;  %v1166_v52 = vpop.permute.xlu1 %1165  ;;  %v1355_v51 = vmul.f32 %v1115_v8, %v3241_v41  ;;  %v1356_v41 = vmul.f32 %v1116_v55, %v3253_v57  ;;  %v1118_v57 = vld [vmem:[%s3032_s18 + $0x28] sm:$0xff] }
 0x258   : > { %1961 = vst [vmem:[%s3516_s8 + $0x88] sm:$0xff] %v1515_v25  ;;  %v1195_v16 = vmul.f32 %v1166_v52, %v1131_v7 }
 0x259   : > { %v1210_v21 = vadd.f32 %v1194_v45, %v1146_v17 }
 0x25a   : > { %v1211_v14 = vadd.f32 %v1195_v16, %v1147_v33  ;;  %v1262_v56 = vpop.permute.xlu0 %1261  ;;  %v1452_v33 = vmul.f32 %v1115_v8, %v3247_v49 }
 0x25b   : > { %1226 = vst [vmem:[%s3504_s5 + $0x8] sm:$0xff] %v1210_v21  ;;  %v1291_v62 = vmul.f32 %v1262_v56, %v1131_v7  ;;  %v1168_v18 = vpop.permute.xlu1 %1167 }
 0x25c   : > { %1227 = vst [vmem:[%s3504_s5 + $0x10] sm:$0xff] %v1211_v14  ;;  %v1196_v47 = vmul.f32 %v1168_v18, %v1132_v10  ;;  %v1117_v14 = vld [vmem:[%s3032_s18 + $0x20] sm:$0xff] }
 0x25d   : > { %v1307_v34 = vadd.f32 %v1291_v62, %v1243_v60 }
 0x25e   : > { %v1212_v26 = vadd.f32 %v1196_v47, %v1148_v13  ;;  %v1374_v5 = vpop.permute.xlu0 %1373  ;;  %v1149_v13 = vmul.f32 %v1117_v14, %v3261_v2 }
 0x25f   : > { %1323 = vst [vmem:[%s3516_s8 + $0x10] sm:$0xff] %v1307_v34  ;;  %v1403_v25 = vmul.f32 %v1374_v5, %v1131_v7  ;;  %v1264_v9 = vpop.permute.xlu1 %1263 }
 0x260   : > { %1228 = vst [vmem:[%s3504_s5 + $0x18] sm:$0xff] %v1212_v26  ;;  %v1292_v17 = vmul.f32 %v1264_v9, %v1132_v10  ;;  %v1134_v26 = vld [vmem:[%s3483_s4 + $0x28] sm:$0xff] }
 0x261   : > { %v1419_v45 = vadd.f32 %v1403_v25, %v1355_v51  ;;  %v1245_v25 = vmul.f32 %v1117_v14, %v3267_v12  ;;  %v1246_v12 = vmul.f32 %v1118_v57, %v3279_v30  ;;  %v1135_v30 = vld [vmem:[%s3483_s4 + $0x30] sm:$0xff] }
 0x262   : > { %v1308_v50 = vadd.f32 %v1292_v17, %v1244_v42  ;;  %v1471_v52 = vpop.permute.xlu0 %1470  ;;  %v1150_v42 = vmul.f32 %v1118_v57, %v3273_v23 }
 0x263   : > { %1946 = vst [vmem:[%s3504_s5 + $0x90] sm:$0xff] %v1419_v45  ;;  %v1500_v16 = vmul.f32 %v1471_v52, %v1131_v7  ;;  %v1376_v21 = vpop.permute.xlu1 %1375  ;;  %v1453_v7 = vmul.f32 %v1116_v55, %v3259_v1  ;;  %v1357_v45 = vmul.f32 %v1117_v14, %v3265_v11  ;;  %v1358_v11 = vmul.f32 %v1118_v57, %v3277_v29  ;;  %v1120_v29 = vld [vmem:[%s3032_s18 + $0x38] sm:$0xff] }
 0x264   : > { %1324 = vst [vmem:[%s3516_s8 + $0x18] sm:$0xff] %v1308_v50  ;;  %v1404_v56 = vmul.f32 %v1376_v21, %v1132_v10 }
 0x265   : > { %v1516_v60 = vadd.f32 %v1500_v16, %v1452_v33 }
 0x266   : > { %v1420_v62 = vadd.f32 %v1404_v56, %v1356_v41  ;;  %v1170_v18 = vpop.permute.xlu0 %1169  ;;  %v1454_v41 = vmul.f32 %v1117_v14, %v3271_v22 }
 0x267   : > { %1962 = vst [vmem:[%s3516_s8 + $0x90] sm:$0xff] %v1516_v60  ;;  %v1473_v49 = vpop.permute.xlu1 %1472  ;;  %v1197_v8 = vmul.f32 %v1170_v18, %v1133_v58 }
 0x268   : > { %1947 = vst [vmem:[%s3504_s5 + $0x98] sm:$0xff] %v1420_v62  ;;  %v1501_v47 = vmul.f32 %v1473_v49, %v1132_v10  ;;  %v1119_v62 = vld [vmem:[%s3032_s18 + $0x30] sm:$0xff] }
 0x269   : > { %v1213_v34 = vadd.f32 %v1197_v8, %v1149_v13 }
 0x26a   : > { %v1517_v5 = vadd.f32 %v1501_v47, %v1453_v7  ;;  %v1266_v51 = vpop.permute.xlu0 %1265  ;;  %v1151_v7 = vmul.f32 %v1119_v62, %v3285_v32 }
 0x26b   : > { %1229 = vst [vmem:[%s3504_s5 + $0x20] sm:$0xff] %v1213_v34  ;;  %v1293_v9 = vmul.f32 %v1266_v51, %v1133_v58  ;;  %v1172_v2 = vpop.permute.xlu1 %1171 }
 0x26c   : > { %1963 = vst [vmem:[%s3516_s8 + $0x98] sm:$0xff] %v1517_v5  ;;  %v1198_v17 = vmul.f32 %v1172_v2, %v1134_v26  ;;  %v1136_v5 = vld [vmem:[%s3483_s4 + $0x38] sm:$0xff] }
 0x26d   : > { %v1309_v1 = vadd.f32 %v1293_v9, %v1245_v25  ;;  %v1247_v9 = vmul.f32 %v1119_v62, %v3291_v36  ;;  %v1248_v36 = vmul.f32 %v1120_v29, %v3303_v40  ;;  %v1137_v40 = vld [vmem:[%s3483_s4 + $0x40] sm:$0xff] }
 0x26e   : > { %v1214_v55 = vadd.f32 %v1198_v17, %v1150_v42  ;;  %v1378_v10 = vpop.permute.xlu0 %1377  ;;  %v1152_v42 = vmul.f32 %v1120_v29, %v3297_v38 }
 0x26f   : > { %1325 = vst [vmem:[%s3516_s8 + $0x20] sm:$0xff] %v1309_v1  ;;  %v1405_v50 = vmul.f32 %v1378_v10, %v1133_v58  ;;  %v1268_v52 = vpop.permute.xlu1 %1267  ;;  %v1359_v1 = vmul.f32 %v1119_v62, %v3289_v35  ;;  %v1360_v35 = vmul.f32 %v1120_v29, %v3301_v39  ;;  %v1122_v39 = vld [vmem:[%s3032_s18 + $0x48] sm:$0xff] }
 0x270   : > { %1230 = vst [vmem:[%s3504_s5 + $0x28] sm:$0xff] %v1214_v55  ;;  %v1294_v33 = vmul.f32 %v1268_v52, %v1134_v26 }
 0x271   : > { %v1421_v16 = vadd.f32 %v1405_v50, %v1357_v45 }
 0x272   : > { %v1310_v23 = vadd.f32 %v1294_v33, %v1246_v12  ;;  %v1475_v21 = vpop.permute.xlu0 %1474  ;;  %v1456_v12 = vmul.f32 %v1119_v62, %v3295_v37 }
 0x273   : > { %1948 = vst [vmem:[%s3504_s5 + $0xa0] sm:$0xff] %v1421_v16  ;;  %v1502_v56 = vmul.f32 %v1475_v21, %v1133_v58  ;;  %v1380_v60 = vpop.permute.xlu1 %1379  ;;  %v1455_v58 = vmul.f32 %v1118_v57, %v3283_v31 }
 0x274   : > { %1326 = vst [vmem:[%s3516_s8 + $0x28] sm:$0xff] %v1310_v23  ;;  %v1406_v18 = vmul.f32 %v1380_v60, %v1134_v26  ;;  %v1121_v23 = vld [vmem:[%s3032_s18 + $0x40] sm:$0xff] }
 0x275   : > { %v1518_v13 = vadd.f32 %v1502_v56, %v1454_v41 }
 0x276   : > { %v1422_v49 = vadd.f32 %v1406_v18, %v1358_v11  ;;  %v1174_v8 = vpop.permute.xlu0 %1173  ;;  %v1153_v11 = vmul.f32 %v1121_v23, %v3309_v44  ;;  %v1457_v18 = vmul.f32 %v1120_v29, %v3307_v43 }
 0x277   : > { %1964 = vst [vmem:[%s3516_s8 + $0xa0] sm:$0xff] %v1518_v13  ;;  %v1477_v22 = vpop.permute.xlu1 %1476  ;;  %v1199_v14 = vmul.f32 %v1174_v8, %v1135_v30 }
 0x278   : > { %1949 = vst [vmem:[%s3504_s5 + $0xa8] sm:$0xff] %v1422_v49  ;;  %v1503_v47 = vmul.f32 %v1477_v22, %v1134_v26  ;;  %v1138_v49 = vld [vmem:[%s3483_s4 + $0x48] sm:$0xff]  ;;  %v1249_v22 = vmul.f32 %v1121_v23, %v3315_v46  ;;  %v3876_v46 = vld [vmem:[#allocation34_spill] sm:$0xff] }
 0x279   : > { %v1215_v34 = vadd.f32 %v1199_v14, %v1151_v7 }
 0x27a   : > { %v1519_v51 = vadd.f32 %v1503_v47, %v1455_v58  ;;  %v1270_v25 = vpop.permute.xlu0 %1269  ;;  %v1154_v58 = vmul.f32 %v1122_v39, %v3321_v48 }
 0x27b   : > { %1231 = vst [vmem:[%s3504_s5 + $0x30] sm:$0xff] %v1215_v34  ;;  %v1295_v2 = vmul.f32 %v1270_v25, %v1135_v30  ;;  %v1176_v32 = vpop.permute.xlu1 %1175 }
 0x27c   : > { %1965 = vst [vmem:[%s3516_s8 + $0xa8] sm:$0xff] %v1519_v51  ;;  %v1200_v17 = vmul.f32 %v1176_v32, %v1136_v5 }
 0x27d   : > { %v1311_v31 = vadd.f32 %v1295_v2, %v1247_v9  ;;  %v1250_v2 = vmul.f32 %v1122_v39, %v3876_v46 }
 0x27e   : > { %v1216_v57 = vadd.f32 %v1200_v17, %v1152_v42  ;;  %v1382_v26 = vpop.permute.xlu0 %1381 }
 0x27f   : > { %1327 = vst [vmem:[%s3516_s8 + $0x30] sm:$0xff] %v1311_v31  ;;  %v1407_v55 = vmul.f32 %v1382_v26, %v1135_v30  ;;  %v1272_v10 = vpop.permute.xlu1 %1271  ;;  %v3877_v31 = vld [vmem:[#allocation32_spill] sm:$0xff] }
 0x280   : > { %1232 = vst [vmem:[%s3504_s5 + $0x38] sm:$0xff] %v1216_v57  ;;  %v1296_v45 = vmul.f32 %v1272_v10, %v1136_v5  ;;  %v1458_v57 = vmul.f32 %v1121_v23, %v3877_v31 }
 0x281   : > { %v1423_v50 = vadd.f32 %v1407_v55, %v1359_v1  ;;  %v3878_v55 = vld [vmem:[#allocation33_spill] sm:$0xff] }
 0x282   : > { %v1312_v38 = vadd.f32 %v1296_v45, %v1248_v36  ;;  %v1479_v52 = vpop.permute.xlu0 %1478  ;;  %v1362_v10 = vmul.f32 %v1122_v39, %v3878_v55  ;;  %v1123_v36 = vld [vmem:[%s3032_s18 + $0x50] sm:$0xff] }
 0x283   : > { %1950 = vst [vmem:[%s3504_s5 + $0xb0] sm:$0xff] %v1423_v50  ;;  %v1504_v33 = vmul.f32 %v1479_v52, %v1135_v30  ;;  %v1384_v16 = vpop.permute.xlu1 %1383  ;;  %v1139_v50 = vld [vmem:[%s3483_s4 + $0x50] sm:$0xff] }
 0x284   : > { %1328 = vst [vmem:[%s3516_s8 + $0x38] sm:$0xff] %v1312_v38  ;;  %v1408_v21 = vmul.f32 %v1384_v16, %v1136_v5 }
 0x285   : > { %v1520_v41 = vadd.f32 %v1504_v33, %v1456_v12  ;;  %v1155_v33 = vmul.f32 %v1123_v36, %v3333_v54 }
 0x286   : > { %v1424_v56 = vadd.f32 %v1408_v21, %v1360_v35  ;;  %v1178_v60 = vpop.permute.xlu0 %1177 }
 0x287   : > { %1966 = vst [vmem:[%s3516_s8 + $0xb0] sm:$0xff] %v1520_v41  ;;  %v1481_v37 = vpop.permute.xlu1 %1480  ;;  %v1201_v62 = vmul.f32 %v1178_v60, %v1137_v40 }
 0x288   : > { %1951 = vst [vmem:[%s3504_s5 + $0xb8] sm:$0xff] %v1424_v56  ;;  %v1505_v30 = vmul.f32 %v1481_v37, %v1136_v5  ;;  %v3875_v5 = vld [vmem:[#allocation31_spill] sm:$0xff]  ;;  %v1140_v56 = vld [vmem:[%s3483_s4 + $0x58] sm:$0xff]  ;;  %v3879_v37 = vld [vmem:[#allocation36_spill] sm:$0xff] }
 0x289   : > { %v1217_v13 = vadd.f32 %v1201_v62, %v1153_v11  ;;  %v1361_v51 = vmul.f32 %v1121_v23, %v3875_v5  ;;  %v1459_v23 = vmul.f32 %v1122_v39, %v3331_v53  ;;  %v1251_v62 = vmul.f32 %v1123_v36, %v3879_v37  ;;  %v3884_v37 = vld [vmem:[#allocation39_spill] sm:$0xff] }
 0x28a   : > { %v1521_v8 = vadd.f32 %v1505_v30, %v1457_v18  ;;  %v1274_v7 = vpop.permute.xlu0 %1273  ;;  %v3880_v30 = vld [vmem:[#allocation37_spill] sm:$0xff] }
 0x28b   : > { %1233 = vst [vmem:[%s3504_s5 + $0x40] sm:$0xff] %v1217_v13  ;;  %v1297_v14 = vmul.f32 %v1274_v7, %v1137_v40  ;;  %v1180_v44 = vpop.permute.xlu1 %1179  ;;  %v3881_v7 = vld [vmem:[#allocation35_spill] sm:$0xff] }
 0x28c   : > { %1967 = vst [vmem:[%s3516_s8 + $0xb8] sm:$0xff] %v1521_v8  ;;  %v1202_v47 = vmul.f32 %v1180_v44, %v1138_v49 }
 0x28d   : > { %v1313_v43 = vadd.f32 %v1297_v14, %v1249_v22  ;;  %v1363_v22 = vmul.f32 %v1123_v36, %v3881_v7 }
 0x28e   : > { %v1218_v29 = vadd.f32 %v1202_v47, %v1154_v58  ;;  %v1386_v34 = vpop.permute.xlu0 %1385  ;;  %v3882_v58 = vld [vmem:[#allocation38_spill] sm:$0xff] }
 0x28f   : > { %1329 = vst [vmem:[%s3516_s8 + $0x40] sm:$0xff] %v1313_v43  ;;  %v1409_v25 = vmul.f32 %v1386_v34, %v1137_v40  ;;  %v1276_v9 = vpop.permute.xlu1 %1275 }
 0x290   : > { %1234 = vst [vmem:[%s3504_s5 + $0x48] sm:$0xff] %v1218_v29  ;;  %v1298_v32 = vmul.f32 %v1276_v9, %v1138_v49 }
 0x291   : > { %v1425_v42 = vadd.f32 %v1409_v25, %v1361_v51  ;;  %v1460_v51 = vmul.f32 %v1123_v36, %v3343_v59  ;;  %v1142_v36 = vld [vmem:[%s3483_s4 + $0x68] sm:$0xff] }
 0x292   : > { %v1314_v48 = vadd.f32 %v1298_v32, %v1250_v2  ;;  %v1483_v17 = vpop.permute.xlu0 %1482  ;;  %v1125_v2 = vld [vmem:[%s3032_s18 + $0x60] sm:$0xff] }
 0x293   : > { %1952 = vst [vmem:[%s3504_s5 + $0xc0] sm:$0xff] %v1425_v42  ;;  %v1506_v26 = vmul.f32 %v1483_v17, %v1137_v40  ;;  %v1388_v1 = vpop.permute.xlu1 %1387  ;;  %v1124_v40 = vld [vmem:[%s3032_s18 + $0x58] sm:$0xff]  ;;  %v1141_v42 = vld [vmem:[%s3483_s4 + $0x60] sm:$0xff] }
 0x294   : > { %1330 = vst [vmem:[%s3516_s8 + $0x48] sm:$0xff] %v1314_v48  ;;  %v1410_v45 = vmul.f32 %v1388_v1, %v1138_v49  ;;  %v1156_v13 = vmul.f32 %v1124_v40, %v3880_v30  ;;  %v1252_v47 = vmul.f32 %v1124_v40, %v3882_v58  ;;  %v1364_v46 = vmul.f32 %v1124_v40, %v3349_v61  ;;  %v1126_v61 = vld [vmem:[%s3032_s18 + $0x68] sm:$0xff] }
 0x295   : > { %v1522_v38 = vadd.f32 %v1506_v26, %v1458_v57  ;;  %v1157_v57 = vmul.f32 %v1125_v2, %v3357_v0  ;;  %v1461_v1 = vmul.f32 %v1124_v40, %v3355_v63 }
 0x296   : > { %v1426_v52 = vadd.f32 %v1410_v45, %v1362_v10  ;;  %v1182_v12 = vpop.permute.xlu0 %1181 }
 0x297   : > { %1968 = vst [vmem:[%s3516_s8 + $0xc0] sm:$0xff] %v1522_v38  ;;  %v1485_v16 = vpop.permute.xlu1 %1484  ;;  %v1203_v35 = vmul.f32 %v1182_v12, %v1139_v50  ;;  %v1253_v38 = vmul.f32 %v1125_v2, %v3363_v4  ;;  %v1158_v12 = vmul.f32 %v1126_v61, %v3369_v6  ;;  %v3883_v4 = vld [vmem:[#allocation41_spill] sm:$0xff] }
 0x298   : > { %1953 = vst [vmem:[%s3504_s5 + $0xc8] sm:$0xff] %v1426_v52  ;;  %v1507_v21 = vmul.f32 %v1485_v16, %v1138_v49 }
 0x299   : > { %v1219_v41 = vadd.f32 %v1203_v35, %v1155_v33 }
 0x29a   : > { %v1523_v60 = vadd.f32 %v1507_v21, %v1459_v23  ;;  %v1278_v11 = vpop.permute.xlu0 %1277  ;;  %v1365_v23 = vmul.f32 %v1125_v2, %v3361_v3  ;;  %v3885_v3 = vld [vmem:[#allocation40_spill] sm:$0xff] }
 0x29b   : > { %1235 = vst [vmem:[%s3504_s5 + $0x50] sm:$0xff] %v1219_v41  ;;  %v1299_v18 = vmul.f32 %v1278_v11, %v1139_v50  ;;  %v1184_v54 = vpop.permute.xlu1 %1183  ;;  %v1254_v41 = vmul.f32 %v1126_v61, %v3883_v4  ;;  %v1366_v30 = vmul.f32 %v1126_v61, %v3885_v3 }
 0x29c   : > { %1969 = vst [vmem:[%s3516_s8 + $0xc8] sm:$0xff] %v1523_v60  ;;  %v1204_v8 = vmul.f32 %v1184_v54, %v1140_v56 }
 0x29d   : > { %v1315_v53 = vadd.f32 %v1299_v18, %v1251_v62  ;;  %v1462_v62 = vmul.f32 %v1125_v2, %v3884_v37 }
 0x29e   : > { %v1220_v39 = vadd.f32 %v1204_v8, %v1156_v13  ;;  %v1390_v49 = vpop.permute.xlu0 %1389  ;;  %v1127_v13 = vld [vmem:[%s3032_s18 + $0x70] sm:$0xff] }
 0x29f   : > { %1331 = vst [vmem:[%s3516_s8 + $0x50] sm:$0xff] %v1315_v53  ;;  %v1411_v14 = vmul.f32 %v1390_v49, %v1139_v50  ;;  %v1280_v44 = vpop.permute.xlu1 %1279  ;;  %v1143_v53 = vld [vmem:[%s3483_s4 + $0x70] sm:$0xff] }
 0x2a0   : > { %1236 = vst [vmem:[%s3504_s5 + $0x58] sm:$0xff] %v1220_v39  ;;  %v1300_v43 = vmul.f32 %v1280_v44, %v1140_v56 }
 0x2a1   : > { %v1427_v29 = vadd.f32 %v1411_v14, %v1363_v22  ;;  %v3886_v22 = vld [vmem:[#allocation43_spill] sm:$0xff] }
 0x2a2   : > { %v1316_v34 = vadd.f32 %v1300_v43, %v1252_v47  ;;  %v1487_v5 = vpop.permute.xlu0 %1486  ;;  %v1159_v14 = vmul.f32 %v1127_v13, %v3886_v22  ;;  %v3887_v47 = vld [vmem:[#allocation42_spill] sm:$0xff] }
 0x2a3   : > { %1954 = vst [vmem:[%s3504_s5 + $0xd0] sm:$0xff] %v1427_v29  ;;  %v1508_v25 = vmul.f32 %v1487_v5, %v1139_v50  ;;  %v1392_v9 = vpop.permute.xlu1 %1391  ;;  %v1463_v43 = vmul.f32 %v1126_v61, %v3887_v47 }
 0x2a4   : > { %1332 = vst [vmem:[%s3516_s8 + $0x58] sm:$0xff] %v1316_v34  ;;  %v1412_v32 = vmul.f32 %v1392_v9, %v1140_v56  ;;  %v1128_v34 = vld [vmem:[%s3032_s18 + $0x78] sm:$0xff] }
 0x2a5   : > { %v1524_v48 = vadd.f32 %v1508_v25, %v1460_v51  ;;  %v1144_v51 = vld [vmem:[%s3483_s4 + $0x78] sm:$0xff] }
 0x2a6   : > { %v1428_v17 = vadd.f32 %v1412_v32, %v1364_v46  ;;  %v1186_v31 = vpop.permute.xlu0 %1185  ;;  %v1255_v46 = vmul.f32 %v1127_v13, %v3387_v19  ;;  %v1256_v19 = vmul.f32 %v1128_v34, %v3399_v27 }
 0x2a7   : > { %1970 = vst [vmem:[%s3516_s8 + $0xd0] sm:$0xff] %v1524_v48  ;;  %v1489_v59 = vpop.permute.xlu1 %1488  ;;  %v1205_v26 = vmul.f32 %v1186_v31, %v1141_v42 }
 0x2a8   : > { %1955 = vst [vmem:[%s3504_s5 + $0xd8] sm:$0xff] %v1428_v17  ;;  %v1509_v55 = vmul.f32 %v1489_v59, %v1140_v56 }
 0x2a9   : > { %v1221_v10 = vadd.f32 %v1205_v26, %v1157_v57  ;;  %v1367_v26 = vmul.f32 %v1127_v13, %v3385_v15 }
 0x2aa   : > { %v1525_v45 = vadd.f32 %v1509_v55, %v1461_v1  ;;  %v1282_v50 = vpop.permute.xlu0 %1281 }
 0x2ab   : > { %1237 = vst [vmem:[%s3504_s5 + $0x60] sm:$0xff] %v1221_v10  ;;  %v1301_v52 = vmul.f32 %v1282_v50, %v1141_v42  ;;  %v1188_v0 = vpop.permute.xlu1 %1187  ;;  %v1464_v50 = vmul.f32 %v1127_v13, %v3391_v20 }
 0x2ac   : > { %1971 = vst [vmem:[%s3516_s8 + $0xd8] sm:$0xff] %v1525_v45  ;;  %v1206_v33 = vmul.f32 %v1188_v0, %v1142_v36 }
 0x2ad   : > { %v1317_v63 = vadd.f32 %v1301_v52, %v1253_v38  ;;  %v1368_v52 = vmul.f32 %v1128_v34, %v3397_v24 }
 0x2ae   : > { %v1222_v16 = vadd.f32 %v1206_v33, %v1158_v12  ;;  %v1394_v35 = vpop.permute.xlu0 %1393 }
 0x2af   : > { %1333 = vst [vmem:[%s3516_s8 + $0x60] sm:$0xff] %v1317_v63  ;;  %v1413_v21 = vmul.f32 %v1394_v35, %v1141_v42  ;;  %v1284_v40 = vpop.permute.xlu1 %1283  ;;  %v1465_v63 = vmul.f32 %v1128_v34, %v3403_v28 }
 0x2b0   : > { %1238 = vst [vmem:[%s3504_s5 + $0x68] sm:$0xff] %v1222_v16  ;;  %v1302_v56 = vmul.f32 %v1284_v40, %v1142_v36 }
 0x2b1   : > { %v1429_v60 = vadd.f32 %v1413_v21, %v1365_v23 }
 0x2b2   : > { %v1318_v6 = vadd.f32 %v1302_v56, %v1254_v41  ;;  %v1491_v11 = vpop.permute.xlu0 %1490 }
 0x2b3   : > { %1956 = vst [vmem:[%s3504_s5 + $0xe0] sm:$0xff] %v1429_v60  ;;  %v1510_v18 = vmul.f32 %v1491_v11, %v1141_v42  ;;  %v1396_v54 = vpop.permute.xlu1 %1395  ;;  %v3888_v42 = vld [vmem:[#allocation44_spill] sm:$0xff] }
 0x2b4   : > { %1334 = vst [vmem:[%s3516_s8 + $0x68] sm:$0xff] %v1318_v6  ;;  %v1414_v8 = vmul.f32 %v1396_v54, %v1142_v36  ;;  %v1160_v48 = vmul.f32 %v1128_v34, %v3888_v42 }
 0x2b5   : > { %v1526_v39 = vadd.f32 %v1510_v18, %v1462_v62 }
 0x2b6   : > { %v1430_v49 = vadd.f32 %v1414_v8, %v1366_v30  ;;  %v1190_v7 = vpop.permute.xlu0 %1189 }
 0x2b7   : > { %1972 = vst [vmem:[%s3516_s8 + $0xe0] sm:$0xff] %v1526_v39  ;;  %v1493_v44 = vpop.permute.xlu1 %1492  ;;  %v1207_v58 = vmul.f32 %v1190_v7, %v1143_v53 }
 0x2b8   : > { %1957 = vst [vmem:[%s3504_s5 + $0xe8] sm:$0xff] %v1430_v49  ;;  %v1511_v29 = vmul.f32 %v1493_v44, %v1142_v36 }
 0x2b9   : > { %v1223_v5 = vadd.f32 %v1207_v58, %v1159_v14 }
 0x2ba   : > { %v1527_v25 = vadd.f32 %v1511_v29, %v1463_v43  ;;  %v1286_v9 = vpop.permute.xlu0 %1285 }
 0x2bb   : > { %1239 = vst [vmem:[%s3504_s5 + $0x70] sm:$0xff] %v1223_v5  ;;  %v1303_v2 = vmul.f32 %v1286_v9, %v1143_v53  ;;  %v1192_v32 = vpop.permute.xlu1 %1191 }
 0x2bc   : > { %1973 = vst [vmem:[%s3516_s8 + $0xe8] sm:$0xff] %v1527_v25  ;;  %v1208_v17 = vmul.f32 %v1192_v32, %v1144_v51 }
 0x2bd   : > { %v1319_v31 = vadd.f32 %v1303_v2, %v1255_v46 }
 0x2be   : > { %v1224_v57 = vadd.f32 %v1208_v17, %v1160_v48  ;;  %v1398_v59 = vpop.permute.xlu0 %1397 }
 0x2bf   : > { %1335 = vst [vmem:[%s3516_s8 + $0x70] sm:$0xff] %v1319_v31  ;;  %v1415_v1 = vmul.f32 %v1398_v59, %v1143_v53  ;;  %v1288_v55 = vpop.permute.xlu1 %1287 }
 0x2c0   : > { %1240 = vst [vmem:[%s3504_s5 + $0x78] sm:$0xff] %v1224_v57  ;;  %v1304_v61 = vmul.f32 %v1288_v55, %v1144_v51 }
 0x2c1   : > { %v1431_v10 = vadd.f32 %v1415_v1, %v1367_v26 }
 0x2c2   : > { %v1320_v36 = vadd.f32 %v1304_v61, %v1256_v19  ;;  %v1495_v45 = vpop.permute.xlu0 %1494 }
 0x2c3   : > { %1958 = vst [vmem:[%s3504_s5 + $0xf0] sm:$0xff] %v1431_v10  ;;  %v1512_v38 = vmul.f32 %v1495_v45, %v1143_v53  ;;  %v1400_v15 = vpop.permute.xlu1 %1399 }
 0x2c4   : > { %1336 = vst [vmem:[%s3516_s8 + $0x78] sm:$0xff] %v1320_v36  ;;  %v1416_v0 = vmul.f32 %v1400_v15, %v1144_v51 }
 0x2c5   : > { %v1528_v12 = vadd.f32 %v1512_v38, %v1464_v50 }
 0x2c6   : > { %v1432_v27 = vadd.f32 %v1416_v0, %v1368_v52 }
 0x2c7   : > { %1974 = vst [vmem:[%s3516_s8 + $0xf0] sm:$0xff] %v1528_v12  ;;  %v1497_v33 = vpop.permute.xlu1 %1496 }
 0x2c8   : > { %1959 = vst [vmem:[%s3504_s5 + $0xf8] sm:$0xff] %v1432_v27  ;;  %v1513_v16 = vmul.f32 %v1497_v33, %v1144_v51 }
 0x2ca   : > { %v1529_v35 = vadd.f32 %v1513_v16, %v1465_v63 }
 0x2cc   : > { %1975 = vst [vmem:[%s3516_s8 + $0xf8] sm:$0xff] %v1529_v35 }
 0x2cd   : > { %s3889_s2 = sld [smem:[#allocation25_spill]]  ;;  %s3890_s26 = sld [smem:[#allocation26_spill]] }
 0x2ce   : > { %s1606_s1 = sshll.u32 %s3504_s5, 4  ;;  %s3891_s16 = sld [smem:[#allocation48_spill]]  ;;  %s1607_s1 = int_to_ptr.vmem [resolvable:$true] %s1606_s1 }
 0x2cf   : > { %s2649_s6 = smov 2048   ;;  %p3892_p9 = scmp.ne.s32.totalorder %s3846_s11, 0 }
 0x2d0   : > { %s2650_s18 = smov 4096   ;;  %s2651_s19 = smov 16  }
 0x2d1   : > { %2243 = sst [smem:[#allocation14]] (%p3892_p9), %s2649_s6  ;;  %s2652_s4 = smov 128  }
 0x2d2   : > { %2244 = sst [smem:[#allocation14 + $0x1]] (%p3892_p9), %s2650_s18  ;;  %s2653_s5 = smov 8  }
 0x2d3   : > { %s1995_s30 = sshll.u32 %s3889_s2, 4  ;;  %s1996_s20 = sshll.u32 %s3890_s26, 6 }
 0x2d4   : > { %s1587_s28 = sadd.s32 %s1996_s20, %s1995_s30  ;;  %2245 = sst [smem:[#allocation14 + $0x2]] (%p3892_p9), %s2651_s19 }
 0x2d5   : > { %s3684_s12 = sshll.u32 %s1587_s28, 7  ;;  %2246 = sst [smem:[#allocation14 + $0x3]] (%p3892_p9), %s2652_s4 }
 0x2d6   : > { %s1589_s0 = scalar_lea.hbm %s3891_s16, %s3684_s12  ;;  %2247 = sst [smem:[#allocation14 + $0x4]] (%p3892_p9), %s2652_s4 }
 0x2d7   : > { %2248 = sst [smem:[#allocation14 + $0x5]] (%p3892_p9), %s2653_s5  ;;  %s2654_s2 = smov [#allocation13]  }
 0x2d8   : > { %s2655_s26 = smov 0  }
 0x2d9   : > { %2249 = dma.general (%p3892_p9), %s1607_s1, 4096, %s1589_s0, %s1565_s14, %s2654_s2, [#allocation14], %s2655_s26, 0  }
 0x2da   : > { %s3893_s28 = sld [smem:[#allocation49_spill]]  ;;  %s1653_s10 = sshll.u32 %s3516_s8, 4  ;;  %s1654_s10 = int_to_ptr.vmem [resolvable:$true] %s1653_s10 }
 0x2db   : > { %s2656_s16 = smov 2048   ;;  %s2657_s14 = smov 4096  }
 0x2dc   : > { %2250 = sst [smem:[#allocation16]] (%p3892_p9), %s2656_s16  ;;  %s2658_s1 = smov 16  }
 0x2dd   : > { %2251 = sst [smem:[#allocation16 + $0x1]] (%p3892_p9), %s2657_s14  ;;  %s2659_s0 = smov 128  }
 0x2de   : > { %2252 = sst [smem:[#allocation16 + $0x2]] (%p3892_p9), %s2658_s1  ;;  %s2660_s6 = smov 8  }
 0x2df   : > { %2253 = sst [smem:[#allocation16 + $0x3]] (%p3892_p9), %s2659_s0  ;;  %s2661_s18 = smov [#allocation15]  }
 0x2e0   : > { %s1636_s17 = scalar_lea.hbm %s3893_s28, %s3684_s12  ;;  %2254 = sst [smem:[#allocation16 + $0x4]] (%p3892_p9), %s2659_s0 }
 0x2e1   : > { %2255 = sst [smem:[#allocation16 + $0x5]] (%p3892_p9), %s2660_s6  ;;  %s2662_s8 = smov 0  }
 0x2e2   : > { %2256 = dma.general (%p3892_p9), %s1654_s10, 4096, %s1636_s17, %s3679_s13, %s2661_s18, [#allocation16], %s2662_s8, 0  }
 0x2e3   : > { %s3894_s5 = sld [smem:[#allocation50_spill]]  ;;  %s1700_s26 = sshll.u32 %s3434_s15, 4  ;;  %s1701_s26 = int_to_ptr.vmem [resolvable:$true] %s1700_s26 }
 0x2e4   : > { %s2663_s30 = smov 2048   ;;  %s2664_s20 = smov 4096  }
 0x2e5   : > { %2257 = sst [smem:[#allocation18]] (%p3892_p9), %s2663_s30  ;;  %s2665_s28 = smov 16  }
 0x2e6   : > { %2258 = sst [smem:[#allocation18 + $0x1]] (%p3892_p9), %s2664_s20  ;;  %s2666_s17 = smov 128  }
 0x2e7   : > { %2259 = sst [smem:[#allocation18 + $0x2]] (%p3892_p9), %s2665_s28  ;;  %s2667_s10 = smov 8  }
 0x2e8   : > { %2260 = sst [smem:[#allocation18 + $0x3]] (%p3892_p9), %s2666_s17  ;;  %s2669_s15 = smov 0  }
 0x2e9   : > { %s1683_s2 = scalar_lea.hbm %s3894_s5, %s3684_s12  ;;  %2261 = sst [smem:[#allocation18 + $0x4]] (%p3892_p9), %s2666_s17 }
 0x2ea   : > { %2262 = sst [smem:[#allocation18 + $0x5]] (%p3892_p9), %s2667_s10  ;;  %s2668_s12 = smov [#allocation17]  }
 0x2eb   : > { %2263 = dma.general (%p3892_p9), %s1701_s26, 4096, %s1683_s2, %s3679_s13, %s2668_s12, [#allocation18], %s2669_s15, 0  }
 0x2ec PF: > { %p2294_p3 = scmp.ge.s32.totalorder %s2636_s7, 2  ;;  %s1728_s16 = sand.u32 1, %s2608_s24  }
 0x2ed   : > { %p3895_p11 = scmp.ne.s32.totalorder %s3847_s21, 0  ;;  %s1729_s14 = scalar_lea.sflag [#allocation4], %s1728_s16 }
 0x2ef   : > { %p2282_p0 = pnand %p2294_p3, %p3895_p11 }
 0x2f1   : > { %2587 = dma.done.wait (!%p2282_p0), %s1729_s14, 4096  }
 0x2f2   : > { %2589 = vsyncadd (!%p2282_p0), %s1729_s14, 4294963200  ;;  %s3896_s1 = sadd.s32 4294967294, %s2636_s7  }
 0x2f3   : > { %s1737_s0 = sand.u32 1, %s3896_s1  }
 0x2f4   : > { %s1738_s6 = scalar_lea.sflag [#allocation11], %s1737_s0 }
 0x2f5   : > { %2591 = dma.done.wait (!%p2282_p0), %s1738_s6, 8192  }
 0x2f6   : > { %2593 = vsyncadd (!%p2282_p0), %s1738_s6, 4294959104  ;;  %s27_s7 = sadd.s32 1, %s2636_s7   ;;  %s3897_s11 = sld [smem:[#allocation24_spill]] }
 0x2f7   : > { %p24_p13 = scmp.ge.s32.totalorder %s27_s7, 6   ;;  %s3898_s26 = sld [smem:[#allocation30_spill]] }
 0x2f8   : > { %s3899_s28 = sld [smem:[#allocation27_spill]]  ;;  %s3900_s13 = sld [smem:[#allocation28_spill]] }
 0x2f9   : > { %s3901_s30 = sld [smem:[#allocation29_spill]]  ;;  %s3902_s21 = smov %s2600_s22 }
 0x2fa   : > { %s3903_s22 = smov %s2604_s23  ;;  %s3904_s23 = smov %s2846_s27 }
 0x2fb   : > { %s3905_s24 = smov %s2612_s25  ;;  %s3907_s27 = smov %s2628_s29 }
 0x2fc   : > { %s3906_s25 = smov %s3897_s11  ;;  %26 = sbr.rel (!%p24_p13) target bundleno = 19 (0x13), region = 157 }
 0x2fe   : > { %s3908_s29 = smov %s3900_s13 }
 0x303   :  { %1752 = vsyncpa [#allocation3], 1 }
 0x304   :  { %1754 = vsyncpa [#allocation3 + $0x1], 1 }
 0x305   :  { %1755 = vsyncpa [#allocation6], 1 }
 0x306   :  { %1756 = vsyncpa [#allocation4], 1 }
 0x307   :  { %1758 = vsyncpa [#allocation4 + $0x1], 1 }
 0x308   :  { %1759 = vsyncpa [#allocation11], 1 }
 0x309   :  { %1761 = vsyncpa [#allocation11 + $0x1], 1 }

</bundles_post_ra>
